<compile_context>
chip_gen: v7x
topology: tpu7x:2x2x1
jax: 0.10.0
libtpu: 0.0.40
codegen_flags: <defaults>
</compile_context>

<pallas_src>
import numpy as np
import jax
import jax.numpy as jnp
from jax import lax
from jax.experimental import pallas as pl
from jax.experimental.pallas import tpu as pltpu

LANES = 128
VMEM_LIMIT = 32 * 1024 * 1024


def _round_up(x, m):
    return ((x + m - 1) // m) * m


def _conv_geom(hin, win, sh, sw):
    """Output / phase-slab geometry for a 3x3, pad=1 conv with stride (sh, sw)."""
    ho = (hin - 1) // sh + 1
    wo = (win - 1) // sw + 1
    hq = ho + (2 // sh)          # rows per stride-phase slab of the padded input
    wq = wo + (2 // sw)
    return ho, wo, hq, wq


# ------------------------- wrapper-side input prep -------------------------

def prep_phased_input(x, sh, sw):
    """Zero-pad spatially by 1 and split into sh*sw stride-phase slabs.

    Returns (N*sh*sw, Hq, Wq, C); phase p = pr*sw + pc holds xpad[:, pr::sh, pc::sw, :].
    For stride 1 this is just the zero-padded input.  This single relayout pass
    replaces an HBM im2col expansion.
    """
    n, h, w, c = x.shape
    _, _, hq, wq = _conv_geom(h, w, sh, sw)
    hp_need = sh * hq
    wp_need = sw * wq
    xpad = jnp.pad(x, ((0, 0), (1, hp_need - h - 1), (1, wp_need - w - 1), (0, 0)))
    if sh == 1 and sw == 1:
        return xpad                                    # (N, H+2, W+2, C)
    slabs = []
    for pr in range(sh):
        for pc in range(sw):
            slabs.append(xpad[:, pr::sh, pc::sw, :][:, :hq, :wq, :])
    xph = jnp.stack(slabs, axis=1)                     # (N, P, Hq, Wq, C)
    return xph.reshape(n * sh * sw, hq, wq, c)


# ------------------------- fused 3x3 conv (+ optional 1x1 shortcut) kernel -------------------------

def _make_conv3x3_kernel(*, sh, sw, hin, win, ho, wo, hq, wq, cin, tn,
                         bn_in, bn_out, add_res, has_sc):
    """[bn+relu prologue] -> 9-tap MXU accumulation -> [bn+relu epilogue]
    -> [residual add] -> store; optionally also the fused 1x1 strided shortcut conv."""
    P = sh * sw
    # 1x1 shortcut (pad=0, stride (sh,sw)) samples padded pixel (oy*sh+1, ox*sw+1):
    p_sc = (1 % sh) * sw + (1 % sw)                    # phase slab holding that lattice
    r0, c0 = 1 // sh, 1 // sw                          # offset inside that slab

    def kernel(*refs):
        i = 0
        x_ref = refs[i]; i += 1                        # (P, hq, wq, cin)  phase slabs
        w_ref = refs[i]; i += 1                        # (3, 3, cin, tn)   bf16
        if bn_in:
            si_ref, bi_ref = refs[i], refs[i + 1]; i += 2   # (1, cin) f32
        if bn_out:
            so_ref, bo_ref = refs[i], refs[i + 1]; i += 2   # (1, tn)  f32
        if add_res:
            r_ref = refs[i]; i += 1                    # (1, ho, wo, tn)
        if has_sc:
            wsc_ref = refs[i]; i += 1                  # (cin, tn)         bf16
        o_ref = refs[i]; i += 1                        # (1, ho, wo, tn)
        if has_sc:
            osc_ref = refs[i]; i += 1                  # (1, ho, wo, tn)

        # Prologue: BN+ReLU on the resident input block (VPU work, hidden under the
        # MXU), with the spatial zero-pad halo forced back to zero.  Cast each phase
        # slab to bf16 ONCE; all 9 taps reuse the cast result.
        hs = []
        for p in range(P):
            pr, pc = p // sw, p % sw
            xv = x_ref[p]                              # (hq, wq, cin)
            if bn_in:
                hv = jnp.maximum(xv * si_ref[...] + bi_ref[...], 0.0)
                rr = pr + sh * lax.broadcasted_iota(jnp.int32, (hq, wq, 1), 0)
                cc = pc + sw * lax.broadcasted_iota(jnp.int32, (hq, wq, 1), 1)
                keep = (rr >= 1) & (rr <= hin) & (cc >= 1) & (cc <= win)
                hv = hv * keep.astype(hv.dtype)        # lane-broadcast multiply
            else:
                hv = xv                                # already activated + zero-padded
            hs.append(hv.astype(jnp.bfloat16))

        # 9-tap accumulation: K consumed in 9 chunks of cin, no im2col patch matrix.
        # bf16 operands, f32 accumulation.
        acc = jnp.zeros((ho * wo, tn), jnp.float32)
        for ky in range(3):
            for kx in range(3):
                p = (ky % sh) * sw + (kx % sw)
                a0, b0 = ky // sh, kx // sw
                tap = hs[p][a0:a0 + ho, b0:b0 + wo, :]         # contiguous static slice
                acc = acc + jnp.dot(tap.reshape(ho * wo, cin), w_ref[ky, kx],
                                    preferred_element_type=jnp.float32)

        out = acc
        if bn_out:
            out = jnp.maximum(out * so_ref[...] + bo_ref[...], 0.0)
        out = out.reshape(ho, wo, tn)
        if add_res:
            out = out + r_ref[0].astype(jnp.float32)
        o_ref[0] = out.astype(o_ref.dtype)

        if has_sc:
            # Fused 1x1 strided shortcut conv on relu(bn1(x)), sharing the prologue.
            sc_lhs = hs[p_sc][r0:r0 + ho, c0:c0 + wo, :].reshape(ho * wo, cin)
            osc = jnp.dot(sc_lhs, wsc_ref[...], preferred_element_type=jnp.float32)
            osc_ref[0] = osc.reshape(ho, wo, tn).astype(osc_ref.dtype)

    return kernel


def conv3x3_fused(xph, w, *, stride, hin, win, bn_in=None, bn_out=None,
                  residual=None, shortcut_w=None,
                  out_dtype=jnp.float32, sc_dtype=jnp.float32):
    sh, sw = stride
    P = sh * sw
    nb = xph.shape[0] // P
    cin = xph.shape[3]
    cout = w.shape[3]
    ho, wo, hq, wq = _conv_geom(hin, win, sh, sw)
    assert xph.shape[1] == hq and xph.shape[2] == wq, (xph.shape, hq, wq)
    assert residual is None or shortcut_w is None
    assert shortcut_w is None or bn_in is not None
    tn = 256 if cout % 256 == 0 else 128        # MXU-friendly, lane-dense output tiles

    kernel = _make_conv3x3_kernel(
        sh=sh, sw=sw, hin=hin, win=win, ho=ho, wo=wo, hq=hq, wq=wq, cin=cin, tn=tn,
        bn_in=bn_in is not None, bn_out=bn_out is not None,
        add_res=residual is not None, has_sc=shortcut_w is not None)

    inputs = [xph, w]
    in_specs = [
        pl.BlockSpec((P, hq, wq, cin), lambda n, j: (n, 0, 0, 0)),   # resident across j
        pl.BlockSpec((3, 3, cin, tn), lambda n, j: (0, 0, 0, j)),
    ]
    if bn_in is not None:
        inputs += list(bn_in)
        in_specs += [pl.BlockSpec((1, cin), lambda n, j: (0, 0))] * 2
    if bn_out is not None:
        inputs += list(bn_out)
        in_specs += [pl.BlockSpec((1, tn), lambda n, j: (0, j))] * 2
    if residual is not None:
        inputs.append(residual)
        in_specs.append(pl.BlockSpec((1, ho, wo, tn), lambda n, j: (n, 0, 0, j)))
    if shortcut_w is not None:
        inputs.append(shortcut_w)
        in_specs.append(pl.BlockSpec((cin, tn), lambda n, j: (0, j)))

    main_shape = jax.ShapeDtypeStruct((nb, ho, wo, cout), out_dtype)
    main_spec = pl.BlockSpec((1, ho, wo, tn), lambda n, j: (n, 0, 0, j))
    if shortcut_w is not None:
        out_shape = (main_shape, jax.ShapeDtypeStruct((nb, ho, wo, cout), sc_dtype))
        out_specs = (main_spec, pl.BlockSpec((1, ho, wo, tn), lambda n, j: (n, 0, 0, j)))
    else:
        out_shape = main_shape
        out_specs = main_spec

    flops = 2 * nb * ho * wo * 9 * cin * cout
    bytes_accessed = (xph.size * xph.dtype.itemsize + w.size * w.dtype.itemsize
                      + nb * ho * wo * cout * np.dtype(out_dtype).itemsize)
    if residual is not None:
        bytes_accessed += residual.size * residual.dtype.itemsize
    if shortcut_w is not None:
        flops += 2 * nb * ho * wo * cin * cout
        bytes_accessed += (shortcut_w.size * shortcut_w.dtype.itemsize
                           + nb * ho * wo * cout * np.dtype(sc_dtype).itemsize)

    return pl.pallas_call(
        kernel,
        out_shape=out_shape,
        grid=(nb, cout // tn),
        in_specs=in_specs,
        out_specs=out_specs,
        compiler_params=pltpu.CompilerParams(
            dimension_semantics=("parallel", "parallel"),
            vmem_limit_bytes=VMEM_LIMIT),
        cost_estimate=pl.CostEstimate(flops=int(flops), transcendentals=0,
                                      bytes_accessed=int(bytes_accessed)),
    )(*inputs)


# ------------------------- parameter init (deterministic, synthetic) -------------------------

def _init_bn(key, c, eps=1e-5):
    k1, k2, k3, k4 = jax.random.split(key, 4)
    gamma = 1.0 + 0.1 * jax.random.uniform(k1, (c,), dtype=jnp.float32)
    beta = 0.05 * jax.random.normal(k2, (c,), dtype=jnp.float32)
    mean = 0.1 * jax.random.normal(k3, (c,), dtype=jnp.float32)
    var = 1.0 + 0.1 * jax.random.uniform(k4, (c,), dtype=jnp.float32)
    scale = gamma / jnp.sqrt(var + eps)
    bias = beta - mean * scale
    return scale, bias


def _pad_vec(v, cp):
    return jnp.pad(v, (0, cp - v.shape[0])).reshape(1, cp)


def _init_conv(key, cin, cout, ksize):
    std = (2.0 / (ksize * ksize * cout)) ** 0.5
    return std * jax.random.normal(key, (cout, cin, ksize, ksize), dtype=jnp.float32)


def conv3x3_w_prep(w_raw, cin_p, cout_p):
    """PyTorch (Cout,Cin,3,3) -> (3,3,Cin_p,Cout_p) bf16, zero-padded channels."""
    cout, cin, _, _ = w_raw.shape
    w = jnp.transpose(w_raw, (2, 3, 1, 0))
    w = jnp.pad(w, ((0, 0), (0, 0), (0, cin_p - cin), (0, cout_p - cout)))
    return w.astype(jnp.bfloat16)


def conv1x1_w_prep(w_raw, cin_p, cout_p):
    cout, cin = w_raw.shape[0], w_raw.shape[1]
    w = jnp.transpose(w_raw[:, :, 0, 0], (1, 0))
    w = jnp.pad(w, ((0, cin_p - cin), (0, cout_p - cout)))
    return w.astype(jnp.bfloat16)


def init_basic_block(key, in_planes, out_planes, stride):
    k1, k2, k3, k4, k5 = jax.random.split(key, 5)
    cin_p = _round_up(in_planes, LANES)
    cout_p = _round_up(out_planes, LANES)
    equal = in_planes == out_planes
    s1, b1 = _init_bn(k1, in_planes)
    s2, b2 = _init_bn(k2, out_planes)
    w1_raw = _init_conv(k3, in_planes, out_planes, 3)
    w2_raw = _init_conv(k4, out_planes, out_planes, 3)
    p = {
        "equal": equal,
        "stride": tuple(stride),
        "out_planes": out_planes,
        "bn1": (s1, b1), "bn2": (s2, b2),          # raw, for the pure-JAX reference
        "bn1_p": (_pad_vec(s1, cin_p), _pad_vec(b1, cin_p)),
        "bn2_p": (_pad_vec(s2, cout_p), _pad_vec(b2, cout_p)),
        "w1_raw": w1_raw, "w2_raw": w2_raw,
        "w1": conv3x3_w_prep(w1_raw, cin_p, cout_p),
        "w2": conv3x3_w_prep(w2_raw, cout_p, cout_p),
    }
    if not equal:
        wsc_raw = _init_conv(k5, in_planes, out_planes, 1)
        p["wsc_raw"] = wsc_raw
        p["wsc"] = conv1x1_w_prep(wsc_raw, cin_p, cout_p)
    return p


def init_group_block(key, nb_layers, in_planes, out_planes, stride):
    keys = jax.random.split(key, int(nb_layers))
    return [
        init_basic_block(keys[i],
                         in_planes if i == 0 else out_planes,
                         out_planes,
                         stride if i == 0 else (1, 1))
        for i in range(int(nb_layers))
    ]


# ------------------------- forward -------------------------

def basic_block_forward(x, p):
    """x: (N, H, W, Cin_p) NHWC f32 (channel-padded).  Returns (N, Ho, Wo, Cout_p)."""
    _, hin, win, _ = x.shape
    stride = p["stride"]
    # shared phased+padded input block for conv1 (and the fused 1x1 shortcut)
    xph = prep_phased_input(x, *stride)

    if p["equal"]:
        # conv1: bn1+relu prologue, 3x3 strided conv, bn2+relu epilogue; bf16 intermediate
        out1 = conv3x3_fused(xph, p["w1"], stride=stride, hin=hin, win=win,
                             bn_in=p["bn1_p"], bn_out=p["bn2_p"],
                             out_dtype=jnp.bfloat16)
        shortcut = x                              # identity (PyTorch equalInOut branch)
    else:
        # same call additionally emits the 1x1 strided shortcut conv as a 2nd output
        out1, shortcut = conv3x3_fused(xph, p["w1"], stride=stride, hin=hin, win=win,
                                       bn_in=p["bn1_p"], bn_out=p["bn2_p"],
                                       shortcut_w=p["wsc"],
                                       out_dtype=jnp.bfloat16, sc_dtype=jnp.float32)
    # TODO(synk): F.dropout with dropRate>0 in training mode not implemented (dropRate=0.0 => no-op).

    # conv2: 3x3 stride-1 conv with the residual add fused into its epilogue
    ho, wo = out1.shape[1], out1.shape[2]
    out1ph = prep_phased_input(out1, 1, 1)
    return conv3x3_fused(out1ph, p["w2"], stride=(1, 1), hin=ho, win=wo,
                         residual=shortcut, out_dtype=jnp.float32)


def group_block_forward(x_nchw, params):
    # Boundary: PyTorch NCHW -> NHWC, channels zero-padded to a lane-dense multiple of 128.
    x = jnp.transpose(x_nchw, (0, 2, 3, 1)).astype(jnp.float32)
    cin = x.shape[-1]
    x = jnp.pad(x, ((0, 0), (0, 0), (0, 0), (0, _round_up(cin, LANES) - cin)))
    for p in params:
        x = basic_block_forward(x, p)
    x = x[..., :params[-1]["out_planes"]]
    return jnp.transpose(x, (0, 3, 1, 2))          # back to NCHW


# ------------------------- pure-JAX reference (for sanity check) -------------------------

def _ref_conv(x, w_raw, stride, pad):
    return lax.conv_general_dilated(
        x, jnp.transpose(w_raw, (2, 3, 1, 0)),
        window_strides=stride, padding=[(pad, pad), (pad, pad)],
        dimension_numbers=("NHWC", "HWIO", "NHWC"))


def _ref_block(x, p):
    s1, b1 = p["bn1"]
    s2, b2 = p["bn2"]
    h = jnp.maximum(x * s1 + b1, 0.0)
    xb = x if p["equal"] else h
    out = _ref_conv(h, p["w1_raw"], p["stride"], 1)
    out = jnp.maximum(out * s2 + b2, 0.0)
    out = _ref_conv(out, p["w2_raw"], (1, 1), 1)
    sc = xb if p["equal"] else _ref_conv(xb, p["wsc_raw"], p["stride"], 0)
    return sc + out


def group_block_reference(x_nchw, params):
    x = jnp.transpose(x_nchw, (0, 2, 3, 1)).astype(jnp.float32)
    for p in params:
        x = _ref_block(x, p)
    return jnp.transpose(x, (0, 3, 1, 2))


# ------------------------- main -------------------------

if __name__ == "__main__":
    key = jax.random.PRNGKey(0)
    kx, kp = jax.random.split(key)

    # Small GroupBlock: 2 layers, 4 -> 8 channels, stride (2,2) on the first layer.
    # (First block exercises the fused shortcut path; second the identity path.)
    N, C_IN, H, W = 2, 4, 16, 16
    C_OUT, NB_LAYERS, STRIDE = 8, 2, (2, 2)

    x = jax.random.normal(kx, (N, C_IN, H, W), dtype=jnp.float32)  # NCHW like PyTorch
    params = init_group_block(kp, NB_LAYERS, C_IN, C_OUT, STRIDE)

    y = jax.block_until_ready(group_block_forward(x, params))
    y_ref = jax.block_until_ready(group_block_reference(x, params))

    assert y.shape == (N, C_OUT, H // STRIDE[0], W // STRIDE[1]), y.shape
    err = float(jnp.max(jnp.abs(y - y_ref)))
    assert jnp.allclose(y, y_ref, atol=2e-2, rtol=2e-2), err

    print("KERNEL_OK")
</pallas_src>

<mosaic_0001>
module attributes {stable_mosaic.version = 11 : i64} {
  func.func @kernel(%arg0: i32, %arg1: i32, %arg2: memref<4x9x9x128xf32, #tpu.memory_space<vmem>>, %arg3: memref<3x3x128x128xbf16, #tpu.memory_space<vmem>>, %arg4: memref<1x128xf32, #tpu.memory_space<vmem>>, %arg5: memref<1x128xf32, #tpu.memory_space<vmem>>, %arg6: memref<1x128xf32, #tpu.memory_space<vmem>>, %arg7: memref<1x128xf32, #tpu.memory_space<vmem>>, %arg8: memref<128x128xbf16, #tpu.memory_space<vmem>>, %arg9: memref<1x8x8x128xbf16, #tpu.memory_space<vmem>>, %arg10: memref<1x8x8x128xf32, #tpu.memory_space<vmem>>) attributes {dimension_semantics = [#tpu.dimension_semantics<parallel>, #tpu.dimension_semantics<parallel>], iteration_bounds = array<i64: 2, 1>, scalar_prefetch = 0 : i64, scratch_operands = 0 : i64, tpu.core_type = #tpu.core_type<tc>, window_params = [{transform_indices = @transform_0, window_bounds = array<i64: 4, 9, 9, 128>}, {transform_indices = @transform_1, window_bounds = array<i64: 3, 3, 128, 128>}, {pipeline_mode = #tpu.pipeline_mode<synchronous>, transform_indices = @transform_2, window_bounds = array<i64: 1, 128>}, {pipeline_mode = #tpu.pipeline_mode<synchronous>, transform_indices = @transform_3, window_bounds = array<i64: 1, 128>}, {transform_indices = @transform_4, window_bounds = array<i64: 1, 128>}, {transform_indices = @transform_5, window_bounds = array<i64: 1, 128>}, {transform_indices = @transform_6, window_bounds = array<i64: 128, 128>}, {transform_indices = @transform_7, window_bounds = array<i64: 1, 8, 8, 128>}, {transform_indices = @transform_8, window_bounds = array<i64: 1, 8, 8, 128>}]} {
    %c0 = arith.constant 0 : index
    %c0_0 = arith.constant 0 : index
    %c0_1 = arith.constant 0 : index
    %c0_2 = arith.constant 0 : index
    %0 = vector.load %arg2[%c0, %c0_0, %c0_1, %c0_2] : memref<4x9x9x128xf32, #tpu.memory_space<vmem>>, vector<1x9x9x128xf32>
    %1 = vector.shape_cast %0 : vector<1x9x9x128xf32> to vector<9x9x128xf32>
    %c0_3 = arith.constant 0 : index
    %c0_4 = arith.constant 0 : index
    %2 = vector.load %arg4[%c0_3, %c0_4] : memref<1x128xf32, #tpu.memory_space<vmem>>, vector<1x128xf32>
    %3 = vector.shape_cast %2 : vector<1x128xf32> to vector<1x1x128xf32>
    %4 = vector.broadcast %3 : vector<1x1x128xf32> to vector<9x9x128xf32>
    %5 = arith.mulf %1, %4 : vector<9x9x128xf32>
    %c0_5 = arith.constant 0 : index
    %c0_6 = arith.constant 0 : index
    %6 = vector.load %arg5[%c0_5, %c0_6] : memref<1x128xf32, #tpu.memory_space<vmem>>, vector<1x128xf32>
    %7 = vector.shape_cast %6 : vector<1x128xf32> to vector<1x1x128xf32>
    %8 = vector.broadcast %7 : vector<1x1x128xf32> to vector<9x9x128xf32>
    %9 = arith.addf %5, %8 : vector<9x9x128xf32>
    %cst = arith.constant 0.000000e+00 : f32
    %10 = vector.broadcast %cst : f32 to vector<9x9x128xf32>
    %11 = arith.maximumf %9, %10 : vector<9x9x128xf32>
    %12 = tpu.iota {dimensions = array<i32: 0>} : vector<9x9x1xi32>
    %c2_i32 = arith.constant 2 : i32
    %13 = vector.broadcast %c2_i32 : i32 to vector<9x9x1xi32>
    %14 = arith.muli %13, %12 : vector<9x9x1xi32>
    %c0_i32 = arith.constant 0 : i32
    %15 = vector.broadcast %c0_i32 : i32 to vector<9x9x1xi32>
    %16 = arith.addi %15, %14 : vector<9x9x1xi32>
    %17 = tpu.iota {dimensions = array<i32: 1>} : vector<9x9x1xi32>
    %c2_i32_7 = arith.constant 2 : i32
    %18 = vector.broadcast %c2_i32_7 : i32 to vector<9x9x1xi32>
    %19 = arith.muli %18, %17 : vector<9x9x1xi32>
    %c0_i32_8 = arith.constant 0 : i32
    %20 = vector.broadcast %c0_i32_8 : i32 to vector<9x9x1xi32>
    %21 = arith.addi %20, %19 : vector<9x9x1xi32>
    %c1_i32 = arith.constant 1 : i32
    %22 = vector.broadcast %c1_i32 : i32 to vector<9x9x1xi32>
    %23 = arith.cmpi sge, %16, %22 : vector<9x9x1xi32>
    %c16_i32 = arith.constant 16 : i32
    %24 = vector.broadcast %c16_i32 : i32 to vector<9x9x1xi32>
    %25 = arith.cmpi sle, %16, %24 : vector<9x9x1xi32>
    %26 = arith.andi %23, %25 : vector<9x9x1xi1>
    %c1_i32_9 = arith.constant 1 : i32
    %27 = vector.broadcast %c1_i32_9 : i32 to vector<9x9x1xi32>
    %28 = arith.cmpi sge, %21, %27 : vector<9x9x1xi32>
    %29 = arith.andi %26, %28 : vector<9x9x1xi1>
    %c16_i32_10 = arith.constant 16 : i32
    %30 = vector.broadcast %c16_i32_10 : i32 to vector<9x9x1xi32>
    %31 = arith.cmpi sle, %21, %30 : vector<9x9x1xi32>
    %32 = arith.andi %29, %31 : vector<9x9x1xi1>
    %33 = arith.extui %32 : vector<9x9x1xi1> to vector<9x9x1xi32>
    %34 = arith.sitofp %33 : vector<9x9x1xi32> to vector<9x9x1xf32>
    %35 = vector.broadcast %34 : vector<9x9x1xf32> to vector<9x9x128xf32>
    %36 = arith.mulf %11, %35 : vector<9x9x128xf32>
    %37 = arith.truncf %36 : vector<9x9x128xf32> to vector<9x9x128xbf16>
    %c1 = arith.constant 1 : index
    %c0_11 = arith.constant 0 : index
    %c0_12 = arith.constant 0 : index
    %c0_13 = arith.constant 0 : index
    %38 = vector.load %arg2[%c1, %c0_11, %c0_12, %c0_13] : memref<4x9x9x128xf32, #tpu.memory_space<vmem>>, vector<1x9x9x128xf32>
    %39 = vector.shape_cast %38 : vector<1x9x9x128xf32> to vector<9x9x128xf32>
    %c0_14 = arith.constant 0 : index
    %c0_15 = arith.constant 0 : index
    %40 = vector.load %arg4[%c0_14, %c0_15] : memref<1x128xf32, #tpu.memory_space<vmem>>, vector<1x128xf32>
    %41 = vector.shape_cast %40 : vector<1x128xf32> to vector<1x1x128xf32>
    %42 = vector.broadcast %41 : vector<1x1x128xf32> to vector<9x9x128xf32>
    %43 = arith.mulf %39, %42 : vector<9x9x128xf32>
    %c0_16 = arith.constant 0 : index
    %c0_17 = arith.constant 0 : index
    %44 = vector.load %arg5[%c0_16, %c0_17] : memref<1x128xf32, #tpu.memory_space<vmem>>, vector<1x128xf32>
    %45 = vector.shape_cast %44 : vector<1x128xf32> to vector<1x1x128xf32>
    %46 = vector.broadcast %45 : vector<1x1x128xf32> to vector<9x9x128xf32>
    %47 = arith.addf %43, %46 : vector<9x9x128xf32>
    %cst_18 = arith.constant 0.000000e+00 : f32
    %48 = vector.broadcast %cst_18 : f32 to vector<9x9x128xf32>
    %49 = arith.maximumf %47, %48 : vector<9x9x128xf32>
    %50 = tpu.iota {dimensions = array<i32: 0>} : vector<9x9x1xi32>
    %c2_i32_19 = arith.constant 2 : i32
    %51 = vector.broadcast %c2_i32_19 : i32 to vector<9x9x1xi32>
    %52 = arith.muli %51, %50 : vector<9x9x1xi32>
    %c0_i32_20 = arith.constant 0 : i32
    %53 = vector.broadcast %c0_i32_20 : i32 to vector<9x9x1xi32>
    %54 = arith.addi %53, %52 : vector<9x9x1xi32>
    %55 = tpu.iota {dimensions = array<i32: 1>} : vector<9x9x1xi32>
    %c2_i32_21 = arith.constant 2 : i32
    %56 = vector.broadcast %c2_i32_21 : i32 to vector<9x9x1xi32>
    %57 = arith.muli %56, %55 : vector<9x9x1xi32>
    %c1_i32_22 = arith.constant 1 : i32
    %58 = vector.broadcast %c1_i32_22 : i32 to vector<9x9x1xi32>
    %59 = arith.addi %58, %57 : vector<9x9x1xi32>
    %c1_i32_23 = arith.constant 1 : i32
    %60 = vector.broadcast %c1_i32_23 : i32 to vector<9x9x1xi32>
    %61 = arith.cmpi sge, %54, %60 : vector<9x9x1xi32>
    %c16_i32_24 = arith.constant 16 : i32
    %62 = vector.broadcast %c16_i32_24 : i32 to vector<9x9x1xi32>
    %63 = arith.cmpi sle, %54, %62 : vector<9x9x1xi32>
    %64 = arith.andi %61, %63 : vector<9x9x1xi1>
    %c1_i32_25 = arith.constant 1 : i32
    %65 = vector.broadcast %c1_i32_25 : i32 to vector<9x9x1xi32>
    %66 = arith.cmpi sge, %59, %65 : vector<9x9x1xi32>
    %67 = arith.andi %64, %66 : vector<9x9x1xi1>
    %c16_i32_26 = arith.constant 16 : i32
    %68 = vector.broadcast %c16_i32_26 : i32 to vector<9x9x1xi32>
    %69 = arith.cmpi sle, %59, %68 : vector<9x9x1xi32>
    %70 = arith.andi %67, %69 : vector<9x9x1xi1>
    %71 = arith.extui %70 : vector<9x9x1xi1> to vector<9x9x1xi32>
    %72 = arith.sitofp %71 : vector<9x9x1xi32> to vector<9x9x1xf32>
    %73 = vector.broadcast %72 : vector<9x9x1xf32> to vector<9x9x128xf32>
    %74 = arith.mulf %49, %73 : vector<9x9x128xf32>
    %75 = arith.truncf %74 : vector<9x9x128xf32> to vector<9x9x128xbf16>
    %c2 = arith.constant 2 : index
    %c0_27 = arith.constant 0 : index
    %c0_28 = arith.constant 0 : index
    %c0_29 = arith.constant 0 : index
    %76 = vector.load %arg2[%c2, %c0_27, %c0_28, %c0_29] : memref<4x9x9x128xf32, #tpu.memory_space<vmem>>, vector<1x9x9x128xf32>
    %77 = vector.shape_cast %76 : vector<1x9x9x128xf32> to vector<9x9x128xf32>
    %c0_30 = arith.constant 0 : index
    %c0_31 = arith.constant 0 : index
    %78 = vector.load %arg4[%c0_30, %c0_31] : memref<1x128xf32, #tpu.memory_space<vmem>>, vector<1x128xf32>
    %79 = vector.shape_cast %78 : vector<1x128xf32> to vector<1x1x128xf32>
    %80 = vector.broadcast %79 : vector<1x1x128xf32> to vector<9x9x128xf32>
    %81 = arith.mulf %77, %80 : vector<9x9x128xf32>
    %c0_32 = arith.constant 0 : index
    %c0_33 = arith.constant 0 : index
    %82 = vector.load %arg5[%c0_32, %c0_33] : memref<1x128xf32, #tpu.memory_space<vmem>>, vector<1x128xf32>
    %83 = vector.shape_cast %82 : vector<1x128xf32> to vector<1x1x128xf32>
    %84 = vector.broadcast %83 : vector<1x1x128xf32> to vector<9x9x128xf32>
    %85 = arith.addf %81, %84 : vector<9x9x128xf32>
    %cst_34 = arith.constant 0.000000e+00 : f32
    %86 = vector.broadcast %cst_34 : f32 to vector<9x9x128xf32>
    %87 = arith.maximumf %85, %86 : vector<9x9x128xf32>
    %88 = tpu.iota {dimensions = array<i32: 0>} : vector<9x9x1xi32>
    %c2_i32_35 = arith.constant 2 : i32
    %89 = vector.broadcast %c2_i32_35 : i32 to vector<9x9x1xi32>
    %90 = arith.muli %89, %88 : vector<9x9x1xi32>
    %c1_i32_36 = arith.constant 1 : i32
    %91 = vector.broadcast %c1_i32_36 : i32 to vector<9x9x1xi32>
    %92 = arith.addi %91, %90 : vector<9x9x1xi32>
    %93 = tpu.iota {dimensions = array<i32: 1>} : vector<9x9x1xi32>
    %c2_i32_37 = arith.constant 2 : i32
    %94 = vector.broadcast %c2_i32_37 : i32 to vector<9x9x1xi32>
    %95 = arith.muli %94, %93 : vector<9x9x1xi32>
    %c0_i32_38 = arith.constant 0 : i32
    %96 = vector.broadcast %c0_i32_38 : i32 to vector<9x9x1xi32>
    %97 = arith.addi %96, %95 : vector<9x9x1xi32>
    %c1_i32_39 = arith.constant 1 : i32
    %98 = vector.broadcast %c1_i32_39 : i32 to vector<9x9x1xi32>
    %99 = arith.cmpi sge, %92, %98 : vector<9x9x1xi32>
    %c16_i32_40 = arith.constant 16 : i32
    %100 = vector.broadcast %c16_i32_40 : i32 to vector<9x9x1xi32>
    %101 = arith.cmpi sle, %92, %100 : vector<9x9x1xi32>
    %102 = arith.andi %99, %101 : vector<9x9x1xi1>
    %c1_i32_41 = arith.constant 1 : i32
    %103 = vector.broadcast %c1_i32_41 : i32 to vector<9x9x1xi32>
    %104 = arith.cmpi sge, %97, %103 : vector<9x9x1xi32>
    %105 = arith.andi %102, %104 : vector<9x9x1xi1>
    %c16_i32_42 = arith.constant 16 : i32
    %106 = vector.broadcast %c16_i32_42 : i32 to vector<9x9x1xi32>
    %107 = arith.cmpi sle, %97, %106 : vector<9x9x1xi32>
    %108 = arith.andi %105, %107 : vector<9x9x1xi1>
    %109 = arith.extui %108 : vector<9x9x1xi1> to vector<9x9x1xi32>
    %110 = arith.sitofp %109 : vector<9x9x1xi32> to vector<9x9x1xf32>
    %111 = vector.broadcast %110 : vector<9x9x1xf32> to vector<9x9x128xf32>
    %112 = arith.mulf %87, %111 : vector<9x9x128xf32>
    %113 = arith.truncf %112 : vector<9x9x128xf32> to vector<9x9x128xbf16>
    %c3 = arith.constant 3 : index
    %c0_43 = arith.constant 0 : index
    %c0_44 = arith.constant 0 : index
    %c0_45 = arith.constant 0 : index
    %114 = vector.load %arg2[%c3, %c0_43, %c0_44, %c0_45] : memref<4x9x9x128xf32, #tpu.memory_space<vmem>>, vector<1x9x9x128xf32>
    %115 = vector.shape_cast %114 : vector<1x9x9x128xf32> to vector<9x9x128xf32>
    %c0_46 = arith.constant 0 : index
    %c0_47 = arith.constant 0 : index
    %116 = vector.load %arg4[%c0_46, %c0_47] : memref<1x128xf32, #tpu.memory_space<vmem>>, vector<1x128xf32>
    %117 = vector.shape_cast %116 : vector<1x128xf32> to vector<1x1x128xf32>
    %118 = vector.broadcast %117 : vector<1x1x128xf32> to vector<9x9x128xf32>
    %119 = arith.mulf %115, %118 : vector<9x9x128xf32>
    %c0_48 = arith.constant 0 : index
    %c0_49 = arith.constant 0 : index
    %120 = vector.load %arg5[%c0_48, %c0_49] : memref<1x128xf32, #tpu.memory_space<vmem>>, vector<1x128xf32>
    %121 = vector.shape_cast %120 : vector<1x128xf32> to vector<1x1x128xf32>
    %122 = vector.broadcast %121 : vector<1x1x128xf32> to vector<9x9x128xf32>
    %123 = arith.addf %119, %122 : vector<9x9x128xf32>
    %cst_50 = arith.constant 0.000000e+00 : f32
    %124 = vector.broadcast %cst_50 : f32 to vector<9x9x128xf32>
    %125 = arith.maximumf %123, %124 : vector<9x9x128xf32>
    %126 = tpu.iota {dimensions = array<i32: 0>} : vector<9x9x1xi32>
    %c2_i32_51 = arith.constant 2 : i32
    %127 = vector.broadcast %c2_i32_51 : i32 to vector<9x9x1xi32>
    %128 = arith.muli %127, %126 : vector<9x9x1xi32>
    %c1_i32_52 = arith.constant 1 : i32
    %129 = vector.broadcast %c1_i32_52 : i32 to vector<9x9x1xi32>
    %130 = arith.addi %129, %128 : vector<9x9x1xi32>
    %131 = tpu.iota {dimensions = array<i32: 1>} : vector<9x9x1xi32>
    %c2_i32_53 = arith.constant 2 : i32
    %132 = vector.broadcast %c2_i32_53 : i32 to vector<9x9x1xi32>
    %133 = arith.muli %132, %131 : vector<9x9x1xi32>
    %c1_i32_54 = arith.constant 1 : i32
    %134 = vector.broadcast %c1_i32_54 : i32 to vector<9x9x1xi32>
    %135 = arith.addi %134, %133 : vector<9x9x1xi32>
    %c1_i32_55 = arith.constant 1 : i32
    %136 = vector.broadcast %c1_i32_55 : i32 to vector<9x9x1xi32>
    %137 = arith.cmpi sge, %130, %136 : vector<9x9x1xi32>
    %c16_i32_56 = arith.constant 16 : i32
    %138 = vector.broadcast %c16_i32_56 : i32 to vector<9x9x1xi32>
    %139 = arith.cmpi sle, %130, %138 : vector<9x9x1xi32>
    %140 = arith.andi %137, %139 : vector<9x9x1xi1>
    %c1_i32_57 = arith.constant 1 : i32
    %141 = vector.broadcast %c1_i32_57 : i32 to vector<9x9x1xi32>
    %142 = arith.cmpi sge, %135, %141 : vector<9x9x1xi32>
    %143 = arith.andi %140, %142 : vector<9x9x1xi1>
    %c16_i32_58 = arith.constant 16 : i32
    %144 = vector.broadcast %c16_i32_58 : i32 to vector<9x9x1xi32>
    %145 = arith.cmpi sle, %135, %144 : vector<9x9x1xi32>
    %146 = arith.andi %143, %145 : vector<9x9x1xi1>
    %147 = arith.extui %146 : vector<9x9x1xi1> to vector<9x9x1xi32>
    %148 = arith.sitofp %147 : vector<9x9x1xi32> to vector<9x9x1xf32>
    %149 = vector.broadcast %148 : vector<9x9x1xf32> to vector<9x9x128xf32>
    %150 = arith.mulf %125, %149 : vector<9x9x128xf32>
    %151 = arith.truncf %150 : vector<9x9x128xf32> to vector<9x9x128xbf16>
    %cst_59 = arith.constant 0.000000e+00 : f32
    %152 = vector.broadcast %cst_59 : f32 to vector<64x128xf32>
    %153 = vector.extract_strided_slice %37 {offsets = [0, 0, 0], sizes = [8, 8, 128], strides = [1, 1, 1]} : vector<9x9x128xbf16> to vector<8x8x128xbf16>
    %154 = vector.shape_cast %153 : vector<8x8x128xbf16> to vector<64x128xbf16>
    %c0_60 = arith.constant 0 : index
    %c0_61 = arith.constant 0 : index
    %c0_62 = arith.constant 0 : index
    %c0_63 = arith.constant 0 : index
    %155 = vector.load %arg3[%c0_60, %c0_61, %c0_62, %c0_63] : memref<3x3x128x128xbf16, #tpu.memory_space<vmem>>, vector<1x1x128x128xbf16>
    %156 = vector.shape_cast %155 : vector<1x1x128x128xbf16> to vector<128x128xbf16>
    %cst_64 = arith.constant dense<0.000000e+00> : vector<64x128xf32>
    %157 = tpu.matmul %154, %156, %cst_64 {dimension_numbers = #tpu.dot_dimension_numbers<[1], [0], [0], [1], [0, 0, 1, 1], [], []>} : vector<64x128xbf16>, vector<128x128xbf16>, vector<64x128xf32> -> vector<64x128xf32>
    %158 = arith.addf %152, %157 : vector<64x128xf32>
    %159 = vector.extract_strided_slice %75 {offsets = [0, 0, 0], sizes = [8, 8, 128], strides = [1, 1, 1]} : vector<9x9x128xbf16> to vector<8x8x128xbf16>
    %160 = vector.shape_cast %159 : vector<8x8x128xbf16> to vector<64x128xbf16>
    %c0_65 = arith.constant 0 : index
    %c1_66 = arith.constant 1 : index
    %c0_67 = arith.constant 0 : index
    %c0_68 = arith.constant 0 : index
    %161 = vector.load %arg3[%c0_65, %c1_66, %c0_67, %c0_68] : memref<3x3x128x128xbf16, #tpu.memory_space<vmem>>, vector<1x1x128x128xbf16>
    %162 = vector.shape_cast %161 : vector<1x1x128x128xbf16> to vector<128x128xbf16>
    %cst_69 = arith.constant dense<0.000000e+00> : vector<64x128xf32>
    %163 = tpu.matmul %160, %162, %cst_69 {dimension_numbers = #tpu.dot_dimension_numbers<[1], [0], [0], [1], [0, 0, 1, 1], [], []>} : vector<64x128xbf16>, vector<128x128xbf16>, vector<64x128xf32> -> vector<64x128xf32>
    %164 = arith.addf %158, %163 : vector<64x128xf32>
    %165 = vector.extract_strided_slice %37 {offsets = [0, 1, 0], sizes = [8, 8, 128], strides = [1, 1, 1]} : vector<9x9x128xbf16> to vector<8x8x128xbf16>
    %166 = vector.shape_cast %165 : vector<8x8x128xbf16> to vector<64x128xbf16>
    %c0_70 = arith.constant 0 : index
    %c2_71 = arith.constant 2 : index
    %c0_72 = arith.constant 0 : index
    %c0_73 = arith.constant 0 : index
    %167 = vector.load %arg3[%c0_70, %c2_71, %c0_72, %c0_73] : memref<3x3x128x128xbf16, #tpu.memory_space<vmem>>, vector<1x1x128x128xbf16>
    %168 = vector.shape_cast %167 : vector<1x1x128x128xbf16> to vector<128x128xbf16>
    %cst_74 = arith.constant dense<0.000000e+00> : vector<64x128xf32>
    %169 = tpu.matmul %166, %168, %cst_74 {dimension_numbers = #tpu.dot_dimension_numbers<[1], [0], [0], [1], [0, 0, 1, 1], [], []>} : vector<64x128xbf16>, vector<128x128xbf16>, vector<64x128xf32> -> vector<64x128xf32>
    %170 = arith.addf %164, %169 : vector<64x128xf32>
    %171 = vector.extract_strided_slice %113 {offsets = [0, 0, 0], sizes = [8, 8, 128], strides = [1, 1, 1]} : vector<9x9x128xbf16> to vector<8x8x128xbf16>
    %172 = vector.shape_cast %171 : vector<8x8x128xbf16> to vector<64x128xbf16>
    %c1_75 = arith.constant 1 : index
    %c0_76 = arith.constant 0 : index
    %c0_77 = arith.constant 0 : index
    %c0_78 = arith.constant 0 : index
    %173 = vector.load %arg3[%c1_75, %c0_76, %c0_77, %c0_78] : memref<3x3x128x128xbf16, #tpu.memory_space<vmem>>, vector<1x1x128x128xbf16>
    %174 = vector.shape_cast %173 : vector<1x1x128x128xbf16> to vector<128x128xbf16>
    %cst_79 = arith.constant dense<0.000000e+00> : vector<64x128xf32>
    %175 = tpu.matmul %172, %174, %cst_79 {dimension_numbers = #tpu.dot_dimension_numbers<[1], [0], [0], [1], [0, 0, 1, 1], [], []>} : vector<64x128xbf16>, vector<128x128xbf16>, vector<64x128xf32> -> vector<64x128xf32>
    %176 = arith.addf %170, %175 : vector<64x128xf32>
    %177 = vector.extract_strided_slice %151 {offsets = [0, 0, 0], sizes = [8, 8, 128], strides = [1, 1, 1]} : vector<9x9x128xbf16> to vector<8x8x128xbf16>
    %178 = vector.shape_cast %177 : vector<8x8x128xbf16> to vector<64x128xbf16>
    %c1_80 = arith.constant 1 : index
    %c1_81 = arith.constant 1 : index
    %c0_82 = arith.constant 0 : index
    %c0_83 = arith.constant 0 : index
    %179 = vector.load %arg3[%c1_80, %c1_81, %c0_82, %c0_83] : memref<3x3x128x128xbf16, #tpu.memory_space<vmem>>, vector<1x1x128x128xbf16>
    %180 = vector.shape_cast %179 : vector<1x1x128x128xbf16> to vector<128x128xbf16>
    %cst_84 = arith.constant dense<0.000000e+00> : vector<64x128xf32>
    %181 = tpu.matmul %178, %180, %cst_84 {dimension_numbers = #tpu.dot_dimension_numbers<[1], [0], [0], [1], [0, 0, 1, 1], [], []>} : vector<64x128xbf16>, vector<128x128xbf16>, vector<64x128xf32> -> vector<64x128xf32>
    %182 = arith.addf %176, %181 : vector<64x128xf32>
    %183 = vector.extract_strided_slice %113 {offsets = [0, 1, 0], sizes = [8, 8, 128], strides = [1, 1, 1]} : vector<9x9x128xbf16> to vector<8x8x128xbf16>
    %184 = vector.shape_cast %183 : vector<8x8x128xbf16> to vector<64x128xbf16>
    %c1_85 = arith.constant 1 : index
    %c2_86 = arith.constant 2 : index
    %c0_87 = arith.constant 0 : index
    %c0_88 = arith.constant 0 : index
    %185 = vector.load %arg3[%c1_85, %c2_86, %c0_87, %c0_88] : memref<3x3x128x128xbf16, #tpu.memory_space<vmem>>, vector<1x1x128x128xbf16>
    %186 = vector.shape_cast %185 : vector<1x1x128x128xbf16> to vector<128x128xbf16>
    %cst_89 = arith.constant dense<0.000000e+00> : vector<64x128xf32>
    %187 = tpu.matmul %184, %186, %cst_89 {dimension_numbers = #tpu.dot_dimension_numbers<[1], [0], [0], [1], [0, 0, 1, 1], [], []>} : vector<64x128xbf16>, vector<128x128xbf16>, vector<64x128xf32> -> vector<64x128xf32>
    %188 = arith.addf %182, %187 : vector<64x128xf32>
    %189 = vector.extract_strided_slice %37 {offsets = [1, 0, 0], sizes = [8, 8, 128], strides = [1, 1, 1]} : vector<9x9x128xbf16> to vector<8x8x128xbf16>
    %190 = vector.shape_cast %189 : vector<8x8x128xbf16> to vector<64x128xbf16>
    %c2_90 = arith.constant 2 : index
    %c0_91 = arith.constant 0 : index
    %c0_92 = arith.constant 0 : index
    %c0_93 = arith.constant 0 : index
    %191 = vector.load %arg3[%c2_90, %c0_91, %c0_92, %c0_93] : memref<3x3x128x128xbf16, #tpu.memory_space<vmem>>, vector<1x1x128x128xbf16>
    %192 = vector.shape_cast %191 : vector<1x1x128x128xbf16> to vector<128x128xbf16>
    %cst_94 = arith.constant dense<0.000000e+00> : vector<64x128xf32>
    %193 = tpu.matmul %190, %192, %cst_94 {dimension_numbers = #tpu.dot_dimension_numbers<[1], [0], [0], [1], [0, 0, 1, 1], [], []>} : vector<64x128xbf16>, vector<128x128xbf16>, vector<64x128xf32> -> vector<64x128xf32>
    %194 = arith.addf %188, %193 : vector<64x128xf32>
    %195 = vector.extract_strided_slice %75 {offsets = [1, 0, 0], sizes = [8, 8, 128], strides = [1, 1, 1]} : vector<9x9x128xbf16> to vector<8x8x128xbf16>
    %196 = vector.shape_cast %195 : vector<8x8x128xbf16> to vector<64x128xbf16>
    %c2_95 = arith.constant 2 : index
    %c1_96 = arith.constant 1 : index
    %c0_97 = arith.constant 0 : index
    %c0_98 = arith.constant 0 : index
    %197 = vector.load %arg3[%c2_95, %c1_96, %c0_97, %c0_98] : memref<3x3x128x128xbf16, #tpu.memory_space<vmem>>, vector<1x1x128x128xbf16>
    %198 = vector.shape_cast %197 : vector<1x1x128x128xbf16> to vector<128x128xbf16>
    %cst_99 = arith.constant dense<0.000000e+00> : vector<64x128xf32>
    %199 = tpu.matmul %196, %198, %cst_99 {dimension_numbers = #tpu.dot_dimension_numbers<[1], [0], [0], [1], [0, 0, 1, 1], [], []>} : vector<64x128xbf16>, vector<128x128xbf16>, vector<64x128xf32> -> vector<64x128xf32>
    %200 = arith.addf %194, %199 : vector<64x128xf32>
    %201 = vector.extract_strided_slice %37 {offsets = [1, 1, 0], sizes = [8, 8, 128], strides = [1, 1, 1]} : vector<9x9x128xbf16> to vector<8x8x128xbf16>
    %202 = vector.shape_cast %201 : vector<8x8x128xbf16> to vector<64x128xbf16>
    %c2_100 = arith.constant 2 : index
    %c2_101 = arith.constant 2 : index
    %c0_102 = arith.constant 0 : index
    %c0_103 = arith.constant 0 : index
    %203 = vector.load %arg3[%c2_100, %c2_101, %c0_102, %c0_103] : memref<3x3x128x128xbf16, #tpu.memory_space<vmem>>, vector<1x1x128x128xbf16>
    %204 = vector.shape_cast %203 : vector<1x1x128x128xbf16> to vector<128x128xbf16>
    %cst_104 = arith.constant dense<0.000000e+00> : vector<64x128xf32>
    %205 = tpu.matmul %202, %204, %cst_104 {dimension_numbers = #tpu.dot_dimension_numbers<[1], [0], [0], [1], [0, 0, 1, 1], [], []>} : vector<64x128xbf16>, vector<128x128xbf16>, vector<64x128xf32> -> vector<64x128xf32>
    %206 = arith.addf %200, %205 : vector<64x128xf32>
    %c0_105 = arith.constant 0 : index
    %c0_106 = arith.constant 0 : index
    %207 = vector.load %arg6[%c0_105, %c0_106] : memref<1x128xf32, #tpu.memory_space<vmem>>, vector<1x128xf32>
    %208 = vector.broadcast %207 : vector<1x128xf32> to vector<64x128xf32>
    %209 = arith.mulf %206, %208 : vector<64x128xf32>
    %c0_107 = arith.constant 0 : index
    %c0_108 = arith.constant 0 : index
    %210 = vector.load %arg7[%c0_107, %c0_108] : memref<1x128xf32, #tpu.memory_space<vmem>>, vector<1x128xf32>
    %211 = vector.broadcast %210 : vector<1x128xf32> to vector<64x128xf32>
    %212 = arith.addf %209, %211 : vector<64x128xf32>
    %cst_109 = arith.constant 0.000000e+00 : f32
    %213 = vector.broadcast %cst_109 : f32 to vector<64x128xf32>
    %214 = arith.maximumf %212, %213 : vector<64x128xf32>
    %215 = vector.shape_cast %214 : vector<64x128xf32> to vector<8x8x128xf32>
    %216 = arith.truncf %215 : vector<8x8x128xf32> to vector<8x8x128xbf16>
    %c0_110 = arith.constant 0 : index
    %c0_111 = arith.constant 0 : index
    %c0_112 = arith.constant 0 : index
    %c0_113 = arith.constant 0 : index
    %217 = vector.load %arg9[%c0_110, %c0_111, %c0_112, %c0_113] : memref<1x8x8x128xbf16, #tpu.memory_space<vmem>>, vector<1x8x8x128xbf16>
    %218 = vector.shape_cast %217 : vector<1x8x8x128xbf16> to vector<8x8x128xbf16>
    %219 = vector.shape_cast %216 : vector<8x8x128xbf16> to vector<1x8x8x128xbf16>
    tpu.vector_store %arg9[%c0_110, %c0_111, %c0_112, %c0_113], %219 {strides = array<i32>} : memref<1x8x8x128xbf16, #tpu.memory_space<vmem>>, vector<1x8x8x128xbf16>,
    %220 = vector.extract_strided_slice %151 {offsets = [0, 0, 0], sizes = [8, 8, 128], strides = [1, 1, 1]} : vector<9x9x128xbf16> to vector<8x8x128xbf16>
    %221 = vector.shape_cast %220 : vector<8x8x128xbf16> to vector<64x128xbf16>
    %c0_114 = arith.constant 0 : index
    %c0_115 = arith.constant 0 : index
    %222 = vector.load %arg8[%c0_114, %c0_115] : memref<128x128xbf16, #tpu.memory_space<vmem>>, vector<128x128xbf16>
    %cst_116 = arith.constant dense<0.000000e+00> : vector<64x128xf32>
    %223 = tpu.matmul %221, %222, %cst_116 {dimension_numbers = #tpu.dot_dimension_numbers<[1], [0], [0], [1], [0, 0, 1, 1], [], []>} : vector<64x128xbf16>, vector<128x128xbf16>, vector<64x128xf32> -> vector<64x128xf32>
    %224 = vector.shape_cast %223 : vector<64x128xf32> to vector<8x8x128xf32>
    %c0_117 = arith.constant 0 : index
    %c0_118 = arith.constant 0 : index
    %c0_119 = arith.constant 0 : index
    %c0_120 = arith.constant 0 : index
    %225 = vector.load %arg10[%c0_117, %c0_118, %c0_119, %c0_120] : memref<1x8x8x128xf32, #tpu.memory_space<vmem>>, vector<1x8x8x128xf32>
    %226 = vector.shape_cast %225 : vector<1x8x8x128xf32> to vector<8x8x128xf32>
    %227 = vector.shape_cast %224 : vector<8x8x128xf32> to vector<1x8x8x128xf32>
    tpu.vector_store %arg10[%c0_117, %c0_118, %c0_119, %c0_120], %227 {strides = array<i32>} : memref<1x8x8x128xf32, #tpu.memory_space<vmem>>, vector<1x8x8x128xf32>,
    return
  }
  func.func @transform_0(%arg0: i32, %arg1: i32) -> (i32, i32, i32, i32) {
    %c0_i32 = arith.constant 0 : i32
    %c0_i32_0 = arith.constant 0 : i32
    %c0_i32_1 = arith.constant 0 : i32
    %c0_i32_2 = arith.constant 0 : i32
    return %arg0, %c0_i32, %c0_i32_0, %c0_i32_1 : i32, i32, i32, i32
  }
  func.func @transform_1(%arg0: i32, %arg1: i32) -> (i32, i32, i32, i32) {
    %c0_i32 = arith.constant 0 : i32
    %c0_i32_0 = arith.constant 0 : i32
    %c0_i32_1 = arith.constant 0 : i32
    %c0_i32_2 = arith.constant 0 : i32
    return %c0_i32, %c0_i32_0, %c0_i32_1, %arg1 : i32, i32, i32, i32
  }
  func.func @transform_2(%arg0: i32, %arg1: i32) -> (i32, i32) {
    %c0_i32 = arith.constant 0 : i32
    %c0_i32_0 = arith.constant 0 : i32
    %c0_i32_1 = arith.constant 0 : i32
    return %c0_i32, %c0_i32_0 : i32, i32
  }
  func.func @transform_3(%arg0: i32, %arg1: i32) -> (i32, i32) {
    %c0_i32 = arith.constant 0 : i32
    %c0_i32_0 = arith.constant 0 : i32
    %c0_i32_1 = arith.constant 0 : i32
    return %c0_i32, %c0_i32_0 : i32, i32
  }
  func.func @transform_4(%arg0: i32, %arg1: i32) -> (i32, i32) {
    %c0_i32 = arith.constant 0 : i32
    %c0_i32_0 = arith.constant 0 : i32
    return %c0_i32, %arg1 : i32, i32
  }
  func.func @transform_5(%arg0: i32, %arg1: i32) -> (i32, i32) {
    %c0_i32 = arith.constant 0 : i32
    %c0_i32_0 = arith.constant 0 : i32
    return %c0_i32, %arg1 : i32, i32
  }
  func.func @transform_6(%arg0: i32, %arg1: i32) -> (i32, i32) {
    %c0_i32 = arith.constant 0 : i32
    %c0_i32_0 = arith.constant 0 : i32
    return %c0_i32, %arg1 : i32, i32
  }
  func.func @transform_7(%arg0: i32, %arg1: i32) -> (i32, i32, i32, i32) {
    %c0_i32 = arith.constant 0 : i32
    %c0_i32_0 = arith.constant 0 : i32
    %c0_i32_1 = arith.constant 0 : i32
    return %arg0, %c0_i32, %c0_i32_0, %arg1 : i32, i32, i32, i32
  }
  func.func @transform_8(%arg0: i32, %arg1: i32) -> (i32, i32, i32, i32) {
    %c0_i32 = arith.constant 0 : i32
    %c0_i32_0 = arith.constant 0 : i32
    %c0_i32_1 = arith.constant 0 : i32
    return %arg0, %c0_i32, %c0_i32_0, %arg1 : i32, i32, i32, i32
  }
}

</mosaic_0001>

<bundles_post_ra>
// kernel: tpu_custom_call.1
= control target key start
LH: loop header
LB: loop body
LE: loop exit
PB: predicated region body
PF: predicated region fallthrough
CT: control target
= control target key end

     0   :  { %14 = vsyncpa [#allocation3], 0  ;;  %s5018_s0 = inlined_call_operand.vmem [shape: f32[8,9,9,128], index: 0, kind: input, shape index: {}]   ;;  %s5019_s1 = inlined_call_operand.vmem [shape: bf16[3,3,128,128], index: 1, kind: input, shape index: {}]   ;;  %s5020_s2 = inlined_call_operand.vmem [shape: f32[1,128], index: 2, kind: input, shape index: {}]   ;;  %s5021_s3 = inlined_call_operand.vmem [shape: f32[1,128], index: 3, kind: input, shape index: {}]   ;;  %s5022_s4 = inlined_call_operand.vmem [shape: f32[1,128], index: 4, kind: input, shape index: {}]   ;;  %s5023_s5 = inlined_call_operand.vmem [shape: f32[1,128], index: 5, kind: input, shape index: {}]   ;;  %s5024_s6 = inlined_call_operand.vmem [shape: bf16[128,128], index: 6, kind: input, shape index: {}]   ;;  %s5025_s7 = inlined_call_operand.hbm [shape: bf16[2,8,8,128], index: 7, kind: output, shape index: {0}]   ;;  %s5026_s8 = inlined_call_operand.hbm [shape: f32[2,8,8,128], index: 8, kind: output, shape index: {1}]  }
   0x1   :  { %16 = vsyncpa [#allocation3 + $0x1], 0 }
   0x2   :  { %17 = vsyncpa [#allocation5], 0 }
   0x3   :  { %19 = vsyncpa [#allocation5 + $0x1], 0  ;;  %s4075_s27 = smov 0   ;;  %s4077_s28 = smov 0  }
   0x4   :  { %s4079_s29 = smov 0   ;;  %s4081_s30 = smov 0  }
   0x5   :  { %s4083_s9 = smov 0   ;;  %s4085_s10 = smov 0  }
   0x6 LB: > { %s2899_s11 = sadd.s32 4294967295, %s4021_s10   ;;  %s2900_s12 = sadd.s32 4294967294, %s4021_s10   ;;  %s4021_s10 = sphi %s4085_s10, %s25_s10   ;;  %s4017_s9 = sphi %s4083_s9, %s5054_s9   ;;  %s4013_s30 = sphi %s4081_s30, %s5053_s30   ;;  %s4009_s29 = sphi %s4079_s29, %s5052_s29   ;;  %s4005_s28 = sphi %s4077_s28, %s5051_s28   ;;  %s4001_s27 = sphi %s4075_s27, %s5050_s27  }
   0x7   : > { %s37_s13 = sadd.s32 1, %s4017_s9  ;;  %s218_s14 = sadd.s32 1, %s4009_s29 }
   0x8   : > { %p39_p0 = scmp.ge.s32.totalorder %s37_s13, 2  ;;  %p228_p1 = scmp.ne.s32.totalorder %s4009_s29, %s4005_s28 }
   0x9   : > { %p229_p2 = scmp.eq.s32.totalorder %s2899_s11, 1  ;;  %p234_p3 = scmp.ne.s32.totalorder %s4005_s28, %s4001_s27 }
   0xa   : > { %s5056_s13 = smov (%p39_p0, %s37_s13), 0  ;;  %p235_p5 = scmp.eq.s32.totalorder %s2900_s12, 1 }
   0xb   : > { %p4115_p4 = por %p229_p2, %p228_p1  ;;  %s213_s16 = ssub.s32 %s4017_s9, %s5056_s13 }
   0xc   : > { %p2907_p6 = scmp.ge.s32.totalorder %s4021_s10, 1  ;;  %p216_p7 = scmp.eq.s32.totalorder %s213_s16, 0 }
   0xd   : > { %p4122_p8 = por %p235_p5, %p234_p3  ;;  %p323_p9 = scmp.lt.s32.totalorder %s4021_s10, 3 }
   0xe   : > { %s4128_s18 = scalar_select %p216_p7, %s4009_s29, %s218_s14  }
   0xf   : > { %p324_p10 = pnand %p2907_p6, %p323_p9 }
  0x11   : > { %327 = sbr.rel (%p324_p10) target bundleno = 467 (0x1d3), region = 48 }
  0x18   : > { %v3829_v0 = vld [vmem:[%s5019_s1 + $0x40] sm:$0xff]   ;;  %s2910_s21 = sshll.u32 %s4013_s30, 2  ;;  %v485_v2 = vlaneseq  ;;  %v3831_v3 = vld [vmem:[%s5019_s1 + $0x48] sm:$0xff]   ;;  %v3833_v5 = vld [vmem:[%s5019_s1 + $0x50] sm:$0xff]   ;;  %v4023_v30 = vmov 0.0   ;;  %s4894_s24 = sand.u32 1, %s4005_s28  }
  0x19   : > { %v3830_v1 = vld [vmem:[%s5019_s1 + $0x100] sm:$0xff]   ;;  %3459 = vmatprep.subr.bf16.mxu1 %v3829_v0  ;;  %p378_p11 = scmp.lt.s32.totalorder %s2910_s21, 7  ;;  %v3832_v4 = vld [vmem:[%s5019_s1 + $0x108] sm:$0xff]   ;;  %v3834_v6 = vld [vmem:[%s5019_s1 + $0x110] sm:$0xff]   ;;  %vm1168_vm9 = vsmask.f32 3328 }
  0x1a   : > { %3555 = vmatprep.subr.bf16.mxu0 %v3830_v1  ;;  %3460 = vmatpush3.bf16.msra.mxu1 %v3829_v0  ;;  %v486_v7 = vshrl.u32 %v485_v2, 7  ;;  %v3835_v8 = vld [vmem:[%s5019_s1 + $0x58] sm:$0xff]   ;;  %v3837_v11 = vld [vmem:[%s5019_s1 + $0x60] sm:$0xff]   ;;  %v3839_v14 = vld [vmem:[%s5019_s1 + $0x68] sm:$0xff]   ;;  %vm1169_vm10 = vsmask.f32 7440 }
  0x1b   : > { %3556 = vmatpush3.bf16.msra.mxu0 %v3830_v1  ;;  %3461 = vmatprep.subr.bf16.mxu1 %v3831_v3  ;;  %s5058_s21 = smov (!%p378_p11, %s2910_s21), 7  ;;  %v3836_v9 = vld [vmem:[%s5019_s1 + $0x118] sm:$0xff]   ;;  %v3838_v12 = vld [vmem:[%s5019_s1 + $0x120] sm:$0xff]   ;;  %v3840_v15 = vld [vmem:[%s5019_s1 + $0x128] sm:$0xff]   ;;  %s2909_s26 = sshll.u32 %s4894_s24, 6 }
  0x1c   : > { %3557 = vmatprep.subr.bf16.mxu0 %v3832_v4  ;;  %v4155_v10 = vmul.u32 2, %v486_v7  ;;  %s3763_s25 = smul.u32 144, %s5058_s21  ;;  %v4178_v16 = vld [vmem:[%s5020_s2] ss:$0 sm:$0xff]  ;;  %v3841_v22 = vld [vmem:[%s5019_s1 + $0x70] sm:$0xff]   ;;  %v4200_v29 = vadd.s32 8, %v486_v7  ;;  %vm4439_vm11 = vmor %vm1168_vm9, %vm1169_vm10 }
  0x1d   : > { %v4183_v17 = vld [vmem:[%s5021_s3] ss:$0 sm:$0xff]  ;;  %v3842_v25 = vld [vmem:[%s5019_s1 + $0x130] sm:$0xff]   ;;  %v3843_v45 = vld [vmem:[%s5019_s1 + $0x78] sm:$0xff]   ;;  %s4905_s14 = scalar_lea.vmem [#allocation4], %s2909_s26  ;;  %s2908_s16 = sshll.u32 %s4894_s24, 5 }
  0x1e   : > { %3462 = vmatpush3.bf16.msra.mxu1 %v3831_v3  ;;  %v610_v13 = vadd.s32 1, %v4155_v10  ;;  %s4167_s20 = scalar_lea.vmem %s5018_s0, %s3763_s25  ;;  %vm490_vm3 = vcmp.ge.s32.totalorder %v4155_v10, 1  ;;  %v3844_v50 = vld [vmem:[%s5019_s1 + $0x138] sm:$0xff]   ;;  %vm496_vm4 = vcmp.le.s32.totalorder %v4155_v10, 16  ;;  %v3845_v58 = vld [vmem:[%s5019_s1] sm:$0xff]   ;;  %s2739_s19 = sshll.u32 %s4905_s14, 4  ;;  %s4918_s19 = int_to_ptr.vmem [resolvable:$true] %s2739_s19 }
  0x1f   : > { %3558 = vmatpush3.bf16.msra.mxu0 %v3832_v4  ;;  %3463 = vmatprep.subr.bf16.mxu1 %v3833_v5  ;;  %v2916_v18 = vld [vmem:[%s4167_s20 + $0x90] sm:$0xff]  ;;  %v2918_v19 = vld [vmem:[%s4167_s20 + $0xa0] sm:$0xff]  ;;  %vm4253_vm5 = vmand %vm490_vm3, %vm496_vm4  ;;  %s3315_s21 = sshll.u32 %s4013_s30, 10  ;;  %s4927_s11 = scalar_lea.vmem [#allocation2], %s2908_s16 }
  0x20   : > { %3559 = vmatprep.subr.bf16.mxu0 %v3834_v6  ;;  %vm612_vm0 = vcmp.ge.s32.totalorder %v610_v13, 1  ;;  %vm618_vm1 = vcmp.le.s32.totalorder %v610_v13, 16  ;;  %v556_v20 = vmul.f32 %v2916_v18, %v4178_v16  ;;  %v558_v21 = vmul.f32 %v2918_v19, %v4178_v16  ;;  %v2952_v23 = vld [vmem:[%s4167_s20 + $0x1b0] sm:$0xff]  ;;  %v2954_v24 = vld [vmem:[%s4167_s20 + $0x1c0] sm:$0xff]  ;;  %s4924_s26 = scalar_lea.hbm %s5026_s8, %s3315_s21  ;;  %s4024_s12 = smov [#allocation4]  }
  0x21   : > { %vm622_vm2 = vmand %vm612_vm0, %vm618_vm1  ;;  %v765_v28 = vmul.f32 %v2952_v23, %v4178_v16  ;;  %v767_v32 = vmul.f32 %v2954_v24, %v4178_v16  ;;  %v2920_v33 = vld [vmem:[%s4167_s20 + $0xb0] sm:$0xff]  ;;  %v2922_v34 = vld [vmem:[%s4167_s20 + $0xc0] sm:$0xff]  ;;  %s3915_s16 = sshll.u32 %s4024_s12, 4  ;;  %s3916_s16 = int_to_ptr.vmem [resolvable:$false] %s3915_s16 }
  0x22   : > { %3464 = vmatpush3.bf16.msra.mxu1 %v3833_v5  ;;  %v574_v26 = vadd.f32 %v4183_v17, %v556_v20  ;;  %v576_v27 = vadd.f32 %v4183_v17, %v558_v21  ;;  %v4204_v31 = vsel %vm622_vm2, 1.0, %v4023_v30  ;;  %v2956_v35 = vld [vmem:[%s4167_s20 + $0x1d0] sm:$0xff]  ;;  %v560_v39 = vmul.f32 %v2920_v33, %v4178_v16  ;;  %v2958_v40 = vld [vmem:[%s4167_s20 + $0x1e0] sm:$0xff]  ;;  %s3917_s21 = scalar_lea.vmem %s3916_s16, 2048  ;;  %p3918_p1 = scmp.lt.s32.totalorder %s4918_s19, %s3916_s16 }
  0x23   : > { %3560 = vmatpush3.bf16.msra.mxu0 %v3834_v6  ;;  %3465 = vmatprep.subr.bf16.mxu1 %v3835_v8  ;;  %v781_v38 = vadd.f32 %v4183_v17, %v765_v28  ;;  %v783_v41 = vadd.f32 %v4183_v17, %v767_v32  ;;  %v562_v42 = vmul.f32 %v2922_v34, %v4178_v16  ;;  %v3846_v1 = vld [vmem:[%s5019_s1 + $0x140] sm:$0xff]   ;;  %v2960_v19 = vld [vmem:[%s4167_s20 + $0x1f0] sm:$0xff] }
  0x24   : > { %3561 = vmatprep.subr.bf16.mxu0 %v3836_v9  ;;  %v592_v36 = vmax.f32 %v574_v26, 0.0  ;;  %v594_v37 = vmax.f32 %v576_v27, 0.0  ;;  %v769_v43 = vmul.f32 %v2956_v35, %v4178_v16  ;;  %v771_v44 = vmul.f32 %v2958_v40, %v4178_v16  ;;  %v2926_v13 = vld [vmem:[%s4167_s20 + $0xe0] sm:$0xff]  ;;  %v3850_v21 = vld [vmem:[%s5019_s1 + $0x150] sm:$0xff]  }
  0x25   : > { %v797_v48 = vmax.f32 %v781_v38, 0.0  ;;  %v578_v49 = vadd.f32 %v4183_v17, %v560_v39  ;;  %v799_v51 = vmax.f32 %v783_v41, 0.0  ;;  %v580_v52 = vadd.f32 %v4183_v17, %v562_v42  ;;  %v2962_v20 = vld [vmem:[%s4167_s20 + $0x200] sm:$0xff]  ;;  %v2928_v28 = vld [vmem:[%s4167_s20 + $0xf0] sm:$0xff]  ;;  %v3851_v42 = vld [vmem:[%s5019_s1 + $0x18] sm:$0xff]  }
  0x26   : > { %3466 = vmatpush3.bf16.msra.mxu1 %v3835_v8  ;;  %v632_v46 = vmul.f32 0.0, %v592_v36  ;;  %v4221_v47 = vmul.f32 %v4204_v31, %v594_v37  ;;  %v785_v53 = vadd.f32 %v4183_v17, %v769_v43  ;;  %v787_v54 = vadd.f32 %v4183_v17, %v771_v44  ;;  %v3847_v8 = vld [vmem:[%s5019_s1 + $0x8] sm:$0xff]   ;;  %v2964_v32 = vld [vmem:[%s4167_s20 + $0x210] sm:$0xff]  ;;  %v2966_v37 = vld [vmem:[%s4167_s20 + $0x220] sm:$0xff] }
  0x27   : > { %3562 = vmatpush3.bf16.msra.mxu0 %v3836_v9  ;;  %3467 = vmatprep.subr.bf16.mxu1 %v3837_v11  ;;  %v813_v56 = vmul.f32 %v4204_v31, %v797_v48  ;;  %v596_v57 = vmax.f32 %v578_v49, 0.0  ;;  %v815_v59 = vmul.f32 %v4204_v31, %v799_v51  ;;  %v598_v60 = vmax.f32 %v580_v52, 0.0  ;;  %v399_v48 = vld [vmem:[%s4167_s20] sm:$0xff] }
  0x28   : > { %3563 = vmatprep.subr.bf16.mxu0 %v3838_v12  ;;  %v3256_v55 = vpack.c.bf16 %v4221_v47, %v632_v46  ;;  %v801_v61 = vmax.f32 %v785_v53, 0.0  ;;  %v803_v62 = vmax.f32 %v787_v54, 0.0  ;;  %v489_v9 = vmul.u32 2, %v4200_v29  ;;  %v2930_v29 = vld [vmem:[%s4167_s20 + $0x100] sm:$0xff]  ;;  %v401_v53 = vld [vmem:[%s4167_s20 + $0x10] sm:$0xff]  ;;  %v3852_v54 = vld [vmem:[%s5019_s1 + $0x158] sm:$0xff]  }
  0x29   : > { %v4238_v63 = vmul.f32 %v4204_v31, %v596_v57  ;;  %v4240_v0 = vpack.c.bf16 %v815_v59, %v813_v56  ;;  %v4246_v2 = vmul.f32 %v4204_v31, %v598_v60  ;;  %v566_v18 = vmul.f32 %v2926_v13, %v4178_v16  ;;  %v2936_v59 = vld [vmem:[%s4167_s20 + $0x120] sm:$0xff] }
  0x2a   : > { %3468 = vmatpush3.bf16.msra.mxu1 %v3837_v11  ;;  %3475 = vmatprep.mubr.bf16.mxu1 %v3256_v55  ;;  %v817_v3 = vmul.f32 %v4204_v31, %v801_v61  ;;  %v819_v5 = vmul.f32 %v4204_v31, %v803_v62  ;;  %v3848_v11 = vld [vmem:[%s5019_s1 + $0x148] sm:$0xff]   ;;  %v773_v23 = vmul.f32 %v2960_v19, %v4178_v16  ;;  %vm4288_vm6 = vcmp.ge.s32.totalorder %v489_v9, 1 }
  0x2b   : > { %3564 = vmatpush3.bf16.msra.mxu0 %v3838_v12  ;;  %3469 = vmatprep.subr.bf16.mxu1 %v3839_v14  ;;  %v3257_v7 = vpack.c.bf16 %v4246_v2, %v4238_v63  ;;  %v2924_v12 = vld [vmem:[%s4167_s20 + $0xd0] sm:$0xff]  ;;  %v775_v24 = vmul.f32 %v2962_v20, %v4178_v16  ;;  %vm4292_vm7 = vcmp.le.s32.totalorder %v489_v9, 16  ;;  %v584_v27 = vadd.f32 %v4183_v17, %v566_v18  ;;  %v3854_v20 = vld [vmem:[%s5019_s1 + $0x160] sm:$0xff]  }
  0x2c   : > { %3565 = vmatprep.subr.bf16.mxu0 %v3840_v15  ;;  %3571 = vmatprep.mubr.bf16.mxu0 %v4240_v0  ;;  %v4267_v10 = vpack.c.bf16 %v819_v5, %v817_v3  ;;  %v789_v34 = vadd.f32 %v4183_v17, %v773_v23  ;;  %v568_v36 = vmul.f32 %v2928_v28, %v4178_v16  ;;  %v4318_v49 = vsel %vm4253_vm5, 1.0, %v4023_v30  ;;  %vm501_vm8 = vmand %vm4288_vm6, %vm4292_vm7  ;;  %v2937_v3 = vld [vmem:[%s4167_s20 + $0x128] sm:$0x1]  ;;  %v2938_v9 = vld [vmem:[%s4167_s20 + $0x130] sm:$0xff] }
  0x2d   : > { %v791_v35 = vadd.f32 %v4183_v17, %v775_v24  ;;  %v602_v38 = vmax.f32 %v584_v27, 0.0  ;;  %v570_v39 = vmul.f32 %v2930_v29, %v4178_v16  ;;  %v777_v40 = vmul.f32 %v2964_v32, %v4178_v16  ;;  %v3855_v24 = vld [vmem:[%s5019_s1 + $0x28] sm:$0xff]  }
  0x2e   : > { %3470 = vmatpush3.bf16.msra.mxu1 %v3839_v14  ;;  %5034 = vst [vmem:[#allocation8_spill] sm:$0xff] %v4267_v10  ;;  %v564_v14 = vmul.f32 %v2924_v12, %v4178_v16  ;;  %v779_v41 = vmul.f32 %v2966_v37, %v4178_v16  ;;  %v805_v44 = vmax.f32 %v789_v34, 0.0  ;;  %v586_v46 = vadd.f32 %v4183_v17, %v568_v36  ;;  %v3853_v12 = vld [vmem:[%s5019_s1 + $0x20] sm:$0xff]  }
  0x2f   : > { %3566 = vmatpush3.bf16.msra.mxu0 %v3840_v15  ;;  %3471 = vmatprep.subr.bf16.mxu1 %v3841_v22  ;;  %v3849_v15 = vld [vmem:[%s5019_s1 + $0x10] sm:$0xff]   ;;  %v588_v51 = vadd.f32 %v4183_v17, %v570_v39  ;;  %v793_v52 = vadd.f32 %v4183_v17, %v777_v40  ;;  %v676_v18 = vmul.f32 %v2936_v59, %v4178_v16  ;;  %v4365_v19 = vsel %vm501_vm8, 1.0, %v4023_v30  ;;  %v403_v34 = vld [vmem:[%s4167_s20 + $0x20] sm:$0xff]  ;;  %v3856_v39 = vld [vmem:[%s5019_s1 + $0x168] sm:$0xff]  }
  0x30   : > { %3567 = vmatprep.subr.bf16.mxu0 %v3842_v25  ;;  %v821_v56 = vmul.f32 %v4204_v31, %v805_v44  ;;  %v795_v62 = vadd.f32 %v4183_v17, %v779_v41  ;;  %v677_v23 = vmul.f32 %v2937_v3, %v4178_v16  ;;  %v678_v26 = vmul.f32 %v2938_v9, %v4178_v16 }
  0x31   : > { %v606_v61 = vmax.f32 %v588_v51, 0.0  ;;  %v692_v32 = vadd.f32 %v4183_v17, %v676_v18 }
  0x32   : > { %3472 = vmatpush3.bf16.msra.mxu1 %v3841_v22  ;;  %v582_v22 = vadd.f32 %v4183_v17, %v564_v14  ;;  %v811_v14 = vmax.f32 %v795_v62, 0.0  ;;  %v694_v37 = vadd.f32 %v4183_v17, %v678_v26 }
  0x33   : > { %3568 = vmatpush3.bf16.msra.mxu0 %v3842_v25  ;;  %3473 = vmatprep.subr.bf16.mxu1 %v3843_v45  ;;  %v4355_v13 = vmul.f32 %v4204_v31, %v606_v61  ;;  %v3858_v61 = vld [vmem:[%s5019_s1 + $0x170] sm:$0xff]  }
  0x34   : > { %3569 = vmatprep.subr.bf16.mxu0 %v3844_v50  ;;  %v600_v33 = vmax.f32 %v582_v22, 0.0  ;;  %v827_v25 = vmul.f32 %v4204_v31, %v811_v14 }
  0x36   : > { %3474 = vmatpush3.bf16.msra.mxu1 %v3843_v45  ;;  %v4311_v43 = vmul.f32 %v4204_v31, %v600_v33  ;;  %v807_v45 = vmax.f32 %v791_v35, 0.0  ;;  %v693_v33 = vadd.f32 %v4183_v17, %v677_v23  ;;  %v405_v35 = vld [vmem:[%s4167_s20 + $0x30] sm:$0xff]  ;;  %v2940_v23 = vld [vmem:[%s4167_s20 + $0x140] sm:$0xff] }
  0x37   : > { %3570 = vmatpush3.bf16.msra.mxu0 %v3844_v50  ;;  %3483 = vmatprep.subr.bf16.mxu1 %v3845_v58  ;;  %v4321_v50 = vmul.f32 %v4204_v31, %v602_v38  ;;  %v430_v51 = vmul.f32 %v4178_v16, %v405_v35 }
  0x38   : > { %3579 = vmatprep.subr.bf16.mxu0 %v3846_v1  ;;  %v823_v57 = vmul.f32 %v4204_v31, %v807_v45  ;;  %v709_v44 = vmax.f32 %v693_v33, 0.0  ;;  %v710_v45 = vmax.f32 %v694_v37, 0.0 }
  0x39   : > { %3476 = vmatmul.mubr.bf16.vlgmr.msra.gmra.mrb[0].mxu1 %v3257_v7  ;;  %v3258_v60 = vpack.c.bf16 %v4321_v50, %v4311_v43  ;;  %v424_v7 = vmul.f32 %v4178_v16, %v399_v48  ;;  %v428_v48 = vmul.f32 %v4178_v16, %v403_v34  ;;  %v455_v14 = vadd.f32 %v4183_v17, %v430_v51  ;;  %v3861_v51 = vld [vmem:[%s5019_s1 + $0x80] sm:$0xff]  }
  0x3a   : > { %3484 = vmatpush3.bf16.msra.mxu1 %v3845_v58  ;;  %3572 = vmatmul.mubr.bf16.vlgmr.msra.gmra.mrb[0].mxu0 %v4267_v10  ;;  %v604_v58 = vmax.f32 %v586_v46, 0.0  ;;  %v4342_v4 = vpack.c.bf16 %v823_v57, %v821_v56  ;;  %v3857_v57 = vld [vmem:[%s5019_s1 + $0x30] sm:$0xff]   ;;  %v4412_v59 = vmul.f32 %v4318_v49, %v710_v45 }
  0x3b   : > { %3580 = vmatpush3.bf16.msra.mxu0 %v3846_v1  ;;  %3485 = vmatprep.subr.bf16.mxu1 %v3847_v8  ;;  %v809_v1 = vmax.f32 %v793_v52, 0.0  ;;  %v473_v34 = vmax.f32 %v455_v14, 0.0 }
  0x3c   : > { %3581 = vmatprep.subr.bf16.mxu0 %v3848_v11  ;;  %5039 = vst [vmem:[#allocation9_spill] sm:$0xff] %v4342_v4  ;;  %v4345_v5 = vmul.f32 %v4204_v31, %v604_v58  ;;  %3479 = vmatprep.mubr.bf16.mxu1 %v3258_v60  ;;  %v725_v58 = vmul.f32 %v4365_v19, %v709_v44 }
  0x3d   : > { %3575 = vmatprep.mubr.bf16.mxu0 %v4342_v4  ;;  %v4447_v45 = vmul.f32 %v4318_v49, %v473_v34 }
  0x3e   : > { %3486 = vmatpush3.bf16.msra.mxu1 %v3847_v8  ;;  %v426_v8 = vmul.f32 %v4178_v16, %v401_v53  ;;  %v3259_v30 = vpack.c.bf16 %v4355_v13, %v4345_v5  ;;  %v3289_v9 = vpack.c.bf16 %v725_v58, %v725_v58  ;;  %v407_v58 = vld [vmem:[%s4167_s20 + $0x40] sm:$0xff] }
  0x3f   : > { %3582 = vmatpush3.bf16.msra.mxu0 %v3848_v11  ;;  %3487 = vmatprep.subr.bf16.mxu1 %v3849_v15  ;;  %v2939_v11 = vld [vmem:[%s4167_s20 + $0x138] sm:$0x1] }
  0x40   : > { %3583 = vmatprep.subr.bf16.mxu0 %v3850_v21  ;;  %v451_v22 = vadd.f32 %v4183_v17, %v426_v8  ;;  %v679_v27 = vmul.f32 %v2939_v11, %v4178_v16  ;;  %v3859_v8 = vld [vmem:[%s5019_s1 + $0x38] sm:$0xff]   ;;  %v3290_v11 = vpack.c.bf16 %v4412_v59, %v4412_v59  ;;  %v1795_v26 = vshll.u32 %v3289_v9, 16 }
  0x41   : > { %3480 = vmatmul.mubr.bf16.gmra.mrb[4].mxu1 %v3259_v30  ;;  %v2941_v30 = vld [vmem:[%s4167_s20 + $0x148] sm:$0x1]  ;;  %v4472_v9 = vpack.c.bf16 %v4447_v45, %v4447_v45 }
  0x42   : > { %3488 = vmatpush3.bf16.msra.mxu1 %v3849_v15  ;;  %v825_v15 = vmul.f32 %v4204_v31, %v809_v1  ;;  %v469_v29 = vmax.f32 %v451_v22, 0.0  ;;  %v695_v38 = vadd.f32 %v4183_v17, %v679_v27  ;;  %v1800_v27 = vshrl.u32 %v3290_v11, 16 }
  0x43   : > { %3584 = vmatpush3.bf16.msra.mxu0 %v3850_v21  ;;  %3489 = vmatprep.subr.bf16.mxu1 %v3851_v42  ;;  %v449_v21 = vadd.f32 %v4183_v17, %v424_v7  ;;  %v453_v7 = vadd.f32 %v4183_v17, %v428_v48  ;;  %v1797_v37 = vrot.slane %v1795_v26, 5  ;;  %v680_v48 = vmul.f32 %v2940_v23, %v4178_v16 }
  0x44   : > { %3585 = vmatprep.subr.bf16.mxu0 %v3852_v54  ;;  %v4386_v36 = vpack.c.bf16 %v827_v25, %v825_v15  ;;  %v4394_v41 = vmul.f32 %v4318_v49, %v469_v29  ;;  %v711_v46 = vmax.f32 %v695_v38, 0.0  ;;  %v3860_v15 = vld [vmem:[%s5019_s1 + $0x178] sm:$0xff]   ;;  %v2942_v25 = vld [vmem:[%s4167_s20 + $0x150] sm:$0xff]  ;;  %v1802_v38 = vrot.slane %v1800_v27, 4  ;;  %v2944_v27 = vld [vmem:[%s4167_s20 + $0x160] sm:$0xff] }
  0x45   : > { %v467_v28 = vmax.f32 %v449_v21, 0.0  ;;  %v471_v33 = vmax.f32 %v453_v7, 0.0  ;;  %v696_v14 = vadd.f32 %v4183_v17, %v680_v48  ;;  %v684_v48 = vmul.f32 %v2944_v27, %v4178_v16 }
  0x46   : > { %3490 = vmatpush3.bf16.msra.mxu1 %v3851_v42  ;;  %5040 = vst [vmem:[#allocation10_spill] sm:$0xff] %v4386_v36  ;;  %v708_v42 = vmax.f32 %v692_v32, 0.0  ;;  %3576 = vmatmul.mubr.bf16.gmra.mrb[4].mxu0 %v4386_v36  ;;  %v727_v60 = vmul.f32 %v4365_v19, %v711_v46  ;;  %v2943_v46 = vld [vmem:[%s4167_s20 + $0x158] sm:$0x1] }
  0x47   : > { %3586 = vmatpush3.bf16.msra.mxu0 %v3852_v54  ;;  %3491 = vmatprep.subr.bf16.mxu1 %v3853_v12  ;;  %v510_v40 = vmul.f32 0.0, %v467_v28  ;;  %v4402_v54 = vpack.c.bf16 %v4394_v41, %v4394_v41  ;;  %v1803_v28 = vshll.u32 %v3290_v11, 16  ;;  %v4444_v44 = vmul.f32 %v4318_v49, %v471_v33 }
  0x48   : > { %3587 = vmatprep.subr.bf16.mxu0 %v3854_v20  ;;  %v4405_v56 = vmul.f32 %v4318_v49, %v708_v42 }
  0x49   : > { %v3260_v52 = vpack.c.bf16 %v4394_v41, %v510_v40  ;;  %v3264_v53 = vpack.c.bf16 %v510_v40, %v510_v40  ;;  %v4468_v7 = vpack.c.bf16 %v4444_v44, %v4444_v44 }
  0x4a   : > { %3492 = vmatpush3.bf16.msra.mxu1 %v3853_v12  ;;  %v3288_v3 = vpack.c.bf16 %v4405_v56, %v4405_v56  ;;  %v3291_v12 = vpack.c.bf16 %v727_v60, %v727_v60  ;;  %v409_v60 = vld [vmem:[%s4167_s20 + $0x50] sm:$0xff] }
  0x4b   : > { %3588 = vmatpush3.bf16.msra.mxu0 %v3854_v20  ;;  %3493 = vmatprep.subr.bf16.mxu1 %v3855_v24  ;;  %v1172_v62 = vshrl.u32 %v3264_v53, 16  ;;  %v1175_v1 = vshll.u32 %v3264_v53, 16  ;;  %v681_v53 = vmul.f32 %v2941_v30, %v4178_v16  ;;  %v3863_v30 = vld [vmem:[%s5019_s1 + $0x88] sm:$0xff]   ;;  %v434_v26 = vmul.f32 %v4178_v16, %v409_v60 }
  0x4c   : > { %3589 = vmatprep.subr.bf16.mxu0 %v3856_v39  ;;  %3499 = vmatprep.mubr.bf16.mxu1 %v3260_v52  ;;  %v1786_v21 = vshrl.u32 %v3288_v3, 16  ;;  %v1789_v22 = vshll.u32 %v3288_v3, 16  ;;  %v3261_v3 = vpack.c.bf16 %v4447_v45, %v4444_v44 }
  0x4d   : > { %v4430_v18 = vrot.slane %v1172_v62, 4  ;;  %v4432_v20 = vrot.slane %v1175_v1, 5 }
  0x4e   : > { %3494 = vmatpush3.bf16.msra.mxu1 %v3855_v24  ;;  %v1809_v24 = vshll.u32 %v3291_v12, 16  ;;  %v1788_v29 = vrot.slane %v1786_v21, 4  ;;  %v1791_v32 = vrot.slane %v1789_v22, 5  ;;  %v683_v12 = vmul.f32 %v2943_v46, %v4178_v16  ;;  %v2947_v46 = vld [vmem:[%s4167_s20 + $0x178] sm:$0x1] }
  0x4f   : > { %3590 = vmatpush3.bf16.msra.mxu0 %v3856_v39  ;;  %3495 = vmatprep.subr.bf16.mxu1 %v3857_v57  ;;  %v1805_v39 = vrot.slane %v1803_v28, 5  ;;  %v697_v21 = vadd.f32 %v4183_v17, %v681_v53 }
  0x50   : > { %3591 = vmatprep.subr.bf16.mxu0 %v3858_v61  ;;  %v1811_v40 = vrot.slane %v1809_v24, 5  ;;  %v1792_v42 = vor.u32 %v1791_v32, %v1788_v29  ;;  %v699_v28 = vadd.f32 %v4183_v17, %v683_v12  ;;  %v712_v24 = vmax.f32 %v696_v14, 0.0  ;;  %v2945_v32 = vld [vmem:[%s4167_s20 + $0x168] sm:$0x1] }
  0x51   : > { %v1806_v52 = vor.u32 %v1805_v39, %v1802_v38  ;;  %v713_v29 = vmax.f32 %v697_v21, 0.0  ;;  %v459_v38 = vadd.f32 %v4183_v17, %v434_v26  ;;  %v2946_v39 = vld [vmem:[%s4167_s20 + $0x170] sm:$0xff] }
  0x52   : > { %3496 = vmatpush3.bf16.msra.mxu1 %v3857_v57  ;;  %v682_v57 = vmul.f32 %v2942_v25, %v4178_v16  ;;  %v1793_v1 = vrot.slane %v1792_v42, 4  ;;  %v432_v25 = vmul.f32 %v4178_v16, %v407_v58  ;;  %v4495_v42 = vmul.f32 %v4318_v49, %v712_v24 }
  0x53   : > { %3592 = vmatpush3.bf16.msra.mxu0 %v3858_v61  ;;  %3497 = vmatprep.subr.bf16.mxu1 %v3859_v8  ;;  %v4462_v61 = vld [vmem:[%s5019_s1 + $0x180] sm:$0xff]   ;;  %v1807_v11 = vrot.slane %v1806_v52, 4  ;;  %v685_v58 = vmul.f32 %v2945_v32, %v4178_v16 }
  0x54   : > { %3593 = vmatprep.subr.bf16.mxu0 %v3860_v15  ;;  %v1798_v22 = vsel %vm4439_vm11, %v1793_v1, %v1797_v37  ;;  %v698_v23 = vadd.f32 %v4183_v17, %v682_v57  ;;  %v457_v37 = vadd.f32 %v4183_v17, %v432_v25  ;;  %v477_v57 = vmax.f32 %v459_v38, 0.0 }
  0x55   : > { %v3292_v1 = vpack.c.bf16 %v4495_v42, %v4495_v42 }
  0x56   : > { %3498 = vmatpush3.bf16.msra.mxu1 %v3859_v8  ;;  %v1812_v8 = vsel %vm4439_vm11, %v1807_v11, %v1811_v40  ;;  %v714_v34 = vmax.f32 %v698_v23, 0.0  ;;  %v729_v40 = vmul.f32 %v4365_v19, %v713_v29  ;;  %v475_v53 = vmax.f32 %v457_v37, 0.0  ;;  %v3865_v11 = vld [vmem:[%s5019_s1 + $0x90] sm:$0xff]  }
  0x57   : > { %3594 = vmatpush3.bf16.msra.mxu0 %v3860_v15  ;;  %3507 = vmatprep.subr.bf16.mxu1 %v3861_v51  ;;  %v3140_v33 = vcombine.low %v1798_v22, %v1812_v8  ;;  %v715_v15 = vmax.f32 %v699_v28, 0.0  ;;  %v4517_v21 = vmul.f32 %v4318_v49, %v477_v57  ;;  %v687_v22 = vmul.f32 %v2947_v46, %v4178_v16  ;;  %v3867_v8 = vld [vmem:[%s5019_s1 + $0x98] sm:$0xff]   ;;  %v411_v28 = vld [vmem:[%s4167_s20 + $0x60] sm:$0xff] }
  0x58   : > { %3603 = vmatprep.subr.bf16.mxu0 %v4462_v61  ;;  %v4501_v52 = vmul.f32 %v4318_v49, %v714_v34  ;;  %v4514_v14 = vmul.f32 %v4318_v49, %v475_v53  ;;  %v1814_v25 = vshrl.u32 %v3292_v1, 16  ;;  %v1817_v26 = vshll.u32 %v3292_v1, 16  ;;  %v413_v53 = vld [vmem:[%s4167_s20 + $0x70] sm:$0xff] }
  0x59   : > { %3500 = vmatmul.mubr.bf16.vlgmr.msra.gmra.mrb[0].mxu1 %v3261_v3  ;;  %3595 = vmatprep.mubr.bf16.mxu0 %v3140_v33  ;;  %v731_v60 = vmul.f32 %v4365_v19, %v715_v15  ;;  %v3293_v3 = vpack.c.bf16 %v729_v40, %v729_v40  ;;  %v4532_v46 = vpack.c.bf16 %v4517_v21, %v4517_v21 }
  0x5a   : > { %3508 = vmatpush3.bf16.msra.mxu1 %v3861_v51  ;;  %v686_v51 = vmul.f32 %v2946_v39, %v4178_v16  ;;  %v3294_v12 = vpack.c.bf16 %v4501_v52, %v4501_v52  ;;  %v3262_v32 = vpack.c.bf16 %v4517_v21, %v4514_v14  ;;  %v4528_v33 = vpack.c.bf16 %v4514_v14, %v4514_v14 }
  0x5b   : > { %3509 = vmatprep.subr.bf16.mxu1 %v3863_v30  ;;  %v3295_v23 = vpack.c.bf16 %v731_v60, %v731_v60  ;;  %v1823_v27 = vshll.u32 %v3293_v3, 16  ;;  %v1816_v34 = vrot.slane %v1814_v25, 4  ;;  %v1819_v37 = vrot.slane %v1817_v26, 5 }
  0x5c   : > { %v1828_v24 = vshrl.u32 %v3294_v12, 16  ;;  %v1831_v29 = vshll.u32 %v3294_v12, 16  ;;  %3503 = vmatprep.mubr.bf16.mxu1 %v3262_v32  ;;  %v701_v1 = vadd.f32 %v4183_v17, %v685_v58  ;;  %v702_v3 = vadd.f32 %v4183_v17, %v686_v51 }
  0x5d   : > { %v1825_v38 = vrot.slane %v1823_v27, 5  ;;  %v1837_v39 = vshll.u32 %v3295_v23, 16  ;;  %v1820_v57 = vor.u32 %v1819_v37, %v1816_v34  ;;  %v703_v23 = vadd.f32 %v4183_v17, %v687_v22 }
  0x5e   : > { %3510 = vmatpush3.bf16.msra.mxu1 %v3863_v30  ;;  %v1830_v15 = vrot.slane %v1828_v24, 4  ;;  %v1833_v40 = vrot.slane %v1831_v29, 5  ;;  %v700_v30 = vadd.f32 %v4183_v17, %v684_v48  ;;  %v436_v26 = vmul.f32 %v4178_v16, %v411_v28  ;;  %v3869_v48 = vld [vmem:[%s5019_s1 + $0xa0] sm:$0xff]  }
  0x5f   : > { %3511 = vmatprep.subr.bf16.mxu1 %v3865_v11  ;;  %v1839_v60 = vrot.slane %v1837_v39, 5  ;;  %v1821_v27 = vrot.slane %v1820_v57, 4  ;;  %v717_v24 = vmax.f32 %v701_v1, 0.0  ;;  %v718_v29 = vmax.f32 %v702_v3, 0.0  ;;  %v3871_v1 = vld [vmem:[%s5019_s1 + $0xa8] sm:$0xff]  }
  0x60   : > { %v1834_v12 = vor.u32 %v1833_v40, %v1830_v15  ;;  %v716_v25 = vmax.f32 %v700_v30, 0.0  ;;  %v438_v32 = vmul.f32 %v4178_v16, %v413_v53  ;;  %v719_v34 = vmax.f32 %v703_v23, 0.0  ;;  %v3864_v40 = vld [vmem:[%s5019_s1 + $0x188] sm:$0xff]  }
  0x61   : > { %v1826_v22 = vsel %vm4439_vm11, %v1821_v27, %v1825_v38  ;;  %v733_v28 = vmul.f32 %v4365_v19, %v717_v24  ;;  %v4552_v37 = vmul.f32 %v4318_v49, %v718_v29  ;;  %v2949_v27 = vld [vmem:[%s4167_s20 + $0x188] sm:$0x1]  ;;  %v2951_v24 = vld [vmem:[%s4167_s20 + $0x198] sm:$0x1]  ;;  %v3866_v29 = vld [vmem:[%s5019_s1 + $0x190] sm:$0xff]  }
  0x62   : > { %3512 = vmatpush3.bf16.msra.mxu1 %v3865_v11  ;;  %v1835_v58 = vrot.slane %v1834_v12, 4  ;;  %v4545_v51 = vmul.f32 %v4318_v49, %v716_v25  ;;  %v461_v11 = vadd.f32 %v4183_v17, %v436_v26  ;;  %v463_v39 = vadd.f32 %v4183_v17, %v438_v32 }
  0x63   : > { %3513 = vmatprep.subr.bf16.mxu1 %v3867_v8  ;;  %v735_v30 = vmul.f32 %v4365_v19, %v719_v34  ;;  %v3298_v3 = vpack.c.bf16 %v4552_v37, %v4552_v37  ;;  %v689_v62 = vmul.f32 %v2949_v27, %v4178_v16 }
  0x64   : > { %v1840_v15 = vsel %vm4439_vm11, %v1835_v58, %v1839_v60  ;;  %v3296_v38 = vpack.c.bf16 %v4545_v51, %v4545_v51  ;;  %v479_v53 = vmax.f32 %v461_v11, 0.0  ;;  %v3297_v60 = vpack.c.bf16 %v733_v28, %v733_v28 }
  0x65   : > { %v3141_v57 = vcombine.low %v1826_v22, %v1840_v15  ;;  %v481_v12 = vmax.f32 %v463_v39, 0.0  ;;  %v3299_v23 = vpack.c.bf16 %v735_v30, %v735_v30  ;;  %v1856_v58 = vshrl.u32 %v3298_v3, 16  ;;  %v2948_v22 = vld [vmem:[%s4167_s20 + $0x180] sm:$0xff] }
  0x66   : > { %3514 = vmatpush3.bf16.msra.mxu1 %v3867_v8  ;;  %v1842_v8 = vshrl.u32 %v3296_v38, 16  ;;  %v1845_v25 = vshll.u32 %v3296_v38, 16  ;;  %v4569_v26 = vmul.f32 %v4318_v49, %v479_v53  ;;  %v1851_v32 = vshll.u32 %v3297_v60, 16  ;;  %v2950_v38 = vld [vmem:[%s4167_s20 + $0x190] sm:$0xff]  ;;  %v400_v53 = vld [vmem:[%s4167_s20 + $0x8] sm:$0x1] }
  0x67   : > { %3515 = vmatprep.subr.bf16.mxu1 %v3869_v48  ;;  %3596 = vmatmul.mubr.bf16.vlgmr.msra.gmra.mrb[0].mxu0 %v3141_v57  ;;  %v1859_v34 = vshll.u32 %v3298_v3, 16  ;;  %v4577_v11 = vmul.f32 %v4318_v49, %v481_v12  ;;  %v1865_v15 = vshll.u32 %v3299_v23, 16  ;;  %v3873_v57 = vld [vmem:[%s5019_s1 + $0xb0] sm:$0xff]   ;;  %v1858_v3 = vrot.slane %v1856_v58, 4 }
  0x68   : > { %3604 = vmatpush3.bf16.msra.mxu0 %v4462_v61  ;;  %v1844_v28 = vrot.slane %v1842_v8, 4  ;;  %v1847_v39 = vrot.slane %v1845_v25, 5  ;;  %v4583_v30 = vpack.c.bf16 %v4569_v26, %v4569_v26  ;;  %v1853_v60 = vrot.slane %v1851_v32, 5 }
  0x69   : > { %3605 = vmatprep.subr.bf16.mxu0 %v3864_v40  ;;  %v1861_v12 = vrot.slane %v1859_v34, 5  ;;  %v3263_v61 = vpack.c.bf16 %v4577_v11, %v4569_v26  ;;  %v1867_v8 = vrot.slane %v1865_v15, 5  ;;  %v4595_v25 = vpack.c.bf16 %v4577_v11, %v4577_v11  ;;  %v3868_v34 = vld [vmem:[%s5019_s1 + $0x198] sm:$0xff]  }
  0x6a   : > { %3516 = vmatpush3.bf16.msra.mxu1 %v3869_v48  ;;  %v402_v48 = vld [vmem:[%s4167_s20 + $0x18] sm:$0x1]  ;;  %v1848_v23 = vor.u32 %v1847_v39, %v1844_v28  ;;  %v688_v55 = vmul.f32 %v2948_v22, %v4178_v16  ;;  %v690_v32 = vmul.f32 %v2950_v38, %v4178_v16  ;;  %v691_v58 = vmul.f32 %v2951_v24, %v4178_v16 }
  0x6b   : > { %3517 = vmatprep.subr.bf16.mxu1 %v3871_v1  ;;  %v1862_v6 = vor.u32 %v1861_v12, %v1858_v3  ;;  %3504 = vmatmul.mubr.bf16.gmra.mrb[4].mxu1 %v3263_v61  ;;  %v425_v15 = vmul.f32 %v4178_v16, %v400_v53  ;;  %v427_v22 = vmul.f32 %v4178_v16, %v402_v48  ;;  %v4618_v16 = vld [vmem:[%s5021_s3] ss:$0 sm:$0xff] }
  0x6c   : > { %3606 = vmatpush3.bf16.msra.mxu0 %v3864_v40  ;;  %v1849_v28 = vrot.slane %v1848_v23, 4  ;;  %v704_v39 = vadd.f32 %v4183_v17, %v688_v55  ;;  %v705_v38 = vadd.f32 %v4183_v17, %v689_v62  ;;  %v706_v24 = vadd.f32 %v4183_v17, %v690_v32 }
  0x6d   : > { %3607 = vmatprep.subr.bf16.mxu0 %v3866_v29  ;;  %v1863_v27 = vrot.slane %v1862_v6, 4  ;;  %v707_v40 = vadd.f32 %v4183_v17, %v691_v58  ;;  %v450_v6 = vadd.f32 %v4618_v16, %v425_v15  ;;  %v452_v62 = vadd.f32 %v4618_v16, %v427_v22  ;;  %v3870_v17 = vld [vmem:[%s5019_s1 + $0x1a0] sm:$0xff]  }
  0x6e   : > { %3518 = vmatpush3.bf16.msra.mxu1 %v3871_v1  ;;  %v3875_v1 = vld [vmem:[%s5019_s1 + $0xb8] sm:$0xff]   ;;  %v1854_v55 = vsel %vm4439_vm11, %v1849_v28, %v1853_v60  ;;  %v720_v3 = vmax.f32 %v704_v39, 0.0  ;;  %v721_v12 = vmax.f32 %v705_v38, 0.0  ;;  %v722_v61 = vmax.f32 %v706_v24, 0.0 }
  0x6f   : > { %3519 = vmatprep.subr.bf16.mxu1 %v3873_v57  ;;  %v1868_v53 = vsel %vm4439_vm11, %v1863_v27, %v1867_v8  ;;  %v723_v60 = vmax.f32 %v707_v40, 0.0  ;;  %v468_v32 = vmax.f32 %v450_v6, 0.0  ;;  %v470_v58 = vmax.f32 %v452_v62, 0.0  ;;  %v3872_v40 = vld [vmem:[%s5019_s1 + $0x1a8] sm:$0xff]  }
  0x70   : > { %3608 = vmatpush3.bf16.msra.mxu0 %v3866_v29  ;;  %v3142_v48 = vcombine.low %v1854_v55, %v1868_v53  ;;  %v4628_v23 = vmul.f32 %v4318_v49, %v720_v3  ;;  %v737_v28 = vmul.f32 %v4365_v19, %v721_v12  ;;  %v4632_v39 = vmul.f32 %v4318_v49, %v722_v61  ;;  %v4640_v29 = vld [vmem:[%s5019_s1 + $0xc0] sm:$0xff]  }
  0x71   : > { %3609 = vmatprep.subr.bf16.mxu0 %v3868_v34  ;;  %v739_v15 = vmul.f32 %v4365_v19, %v723_v60  ;;  %v5043_v8 = vshrl.u32 %v4402_v54, 16  ;;  %v511_v27 = vmul.f32 0.0, %v468_v32  ;;  %v513_v38 = vmul.f32 %v4365_v19, %v470_v58  ;;  %v406_v32 = vld [vmem:[%s4167_s20 + $0x38] sm:$0x1] }
  0x72   : > { %3520 = vmatpush3.bf16.msra.mxu1 %v3873_v57  ;;  %3599 = vmatprep.mubr.bf16.mxu0 %v3142_v48  ;;  %v3300_v57 = vpack.c.bf16 %v4628_v23, %v4628_v23  ;;  %v1178_v24 = vor.u32 %v4432_v20, %v4430_v18  ;;  %v3301_v55 = vpack.c.bf16 %v737_v28, %v737_v28  ;;  %v1189_v62 = vshll.u32 %v4402_v54, 16  ;;  %v404_v48 = vld [vmem:[%s4167_s20 + $0x28] sm:$0x1] }
  0x73   : > { %3521 = vmatprep.subr.bf16.mxu1 %v3875_v1  ;;  %v1188_v22 = vrot.slane %v5043_v8, 4  ;;  %v3302_v3 = vpack.c.bf16 %v4632_v39, %v4632_v39  ;;  %v3303_v6 = vpack.c.bf16 %v739_v15, %v739_v15  ;;  %v3265_v61 = vpack.c.bf16 %v511_v27, %v511_v27 }
  0x74   : > { %3610 = vmatpush3.bf16.msra.mxu0 %v3868_v34  ;;  %v1870_v53 = vshrl.u32 %v3300_v57, 16  ;;  %v1873_v12 = vshll.u32 %v3300_v57, 16  ;;  %v3267_v60 = vpack.c.bf16 %v513_v38, %v513_v38  ;;  %v1879_v18 = vshll.u32 %v3301_v55, 16 }
  0x75   : > { %3611 = vmatprep.subr.bf16.mxu0 %v3870_v17  ;;  %v1884_v20 = vshrl.u32 %v3302_v3, 16  ;;  %v1887_v58 = vshll.u32 %v3302_v3, 16  ;;  %v1893_v8 = vshll.u32 %v3303_v6, 16  ;;  %v1179_v15 = vrot.slane %v1178_v24, 4 }
  0x76   : > { %3522 = vmatpush3.bf16.msra.mxu1 %v3875_v1  ;;  %v1872_v28 = vrot.slane %v1870_v53, 4  ;;  %v1875_v36 = vrot.slane %v1873_v12, 5  ;;  %v1181_v4 = vshll.u32 %v3265_v61, 16  ;;  %v1881_v54 = vrot.slane %v1879_v18, 5  ;;  %v3874_v1 = vld [vmem:[%s5019_s1 + $0x1b0] sm:$0xff]  }
  0x77   : > { %3531 = vmatprep.subr.bf16.mxu1 %v4640_v29  ;;  %v1886_v34 = vrot.slane %v1884_v20, 4  ;;  %v1889_v10 = vrot.slane %v1887_v58, 5  ;;  %v1895_v57 = vrot.slane %v1893_v8, 5  ;;  %v1191_v55 = vrot.slane %v1189_v62, 5  ;;  %v4664_v53 = vld [vmem:[%s5020_s2] ss:$0 sm:$0xff] }
  0x78   : > { %3612 = vmatpush3.bf16.msra.mxu0 %v3870_v17  ;;  %v1876_v27 = vor.u32 %v1875_v36, %v1872_v28  ;;  %v1183_v38 = vrot.slane %v1181_v4, 5  ;;  %v1195_v3 = vshll.u32 %v3267_v60, 16  ;;  %v3304_v24 = vpack.c.bf16 %v4444_v44, %v4394_v41  ;;  %v408_v18 = vld [vmem:[%s4167_s20 + $0x48] sm:$0x1]  ;;  %v410_v20 = vld [vmem:[%s4167_s20 + $0x58] sm:$0x1] }
  0x79   : > { %3613 = vmatprep.subr.bf16.mxu0 %v3872_v40  ;;  %v1890_v6 = vor.u32 %v1889_v10, %v1886_v34  ;;  %v429_v17 = vmul.f32 %v4664_v53, %v404_v48  ;;  %v431_v12 = vmul.f32 %v4664_v53, %v406_v32  ;;  %v1192_v62 = vor.u32 %v1191_v55, %v1188_v22  ;;  %v3876_v28 = vld [vmem:[%s5019_s1 + $0x1b8] sm:$0xff]  }
  0x7a   : > { %v1877_v36 = vrot.slane %v1876_v27, 4  ;;  %v1184_v4 = vsel %vm4439_vm11, %v1179_v15, %v1183_v38  ;;  %v1197_v61 = vrot.slane %v1195_v3, 5  ;;  %v1200_v44 = vshrl.u32 %v4468_v7, 16 }
  0x7b   : > { %v1891_v60 = vrot.slane %v1890_v6, 4  ;;  %v454_v10 = vadd.f32 %v4618_v16, %v429_v17  ;;  %v456_v41 = vadd.f32 %v4618_v16, %v431_v12  ;;  %v1193_v32 = vrot.slane %v1192_v62, 4 }
  0x7c   : > { %3614 = vmatpush3.bf16.msra.mxu0 %v3872_v40  ;;  %v1882_v48 = vsel %vm4439_vm11, %v1877_v36, %v1881_v54  ;;  %v1203_v58 = vshll.u32 %v4468_v7, 16  ;;  %v1214_v8 = vshrl.u32 %v4472_v9, 16  ;;  %v1202_v27 = vrot.slane %v1200_v44, 4 }
  0x7d   : > { %3615 = vmatprep.subr.bf16.mxu0 %v3874_v1  ;;  %v1896_v22 = vsel %vm4439_vm11, %v1891_v60, %v1895_v57  ;;  %v472_v15 = vmax.f32 %v454_v10, 0.0  ;;  %v474_v34 = vmax.f32 %v456_v41, 0.0  ;;  %v4686_v54 = vsel %vm4439_vm11, %v1193_v32, %v1197_v61 }
  0x7e   : > { %v3143_v40 = vcombine.low %v1882_v48, %v1896_v22  ;;  %v1205_v38 = vrot.slane %v1203_v58, 5  ;;  %v1216_v7 = vrot.slane %v1214_v8, 4  ;;  %v3040_v55 = vcombine.low %v1184_v4, %v4686_v54  ;;  %v3878_v4 = vld [vmem:[%s5019_s1 + $0x1c0] sm:$0xff]  }
  0x7f   : > { %v515_v3 = vmul.f32 %v4365_v19, %v472_v15  ;;  %v517_v57 = vmul.f32 %v4365_v19, %v474_v34  ;;  %v1217_v6 = vshll.u32 %v4472_v9, 16  ;;  %v3305_v12 = vpack.c.bf16 %v4514_v14, %v4447_v45  ;;  %v412_v15 = vld [vmem:[%s4167_s20 + $0x68] sm:$0x1] }
  0x80   : > { %3600 = vmatmul.mubr.bf16.gmra.mrb[4].mxu0 %v3143_v40  ;;  %v1206_v17 = vor.u32 %v1205_v38, %v1202_v27  ;;  %v433_v36 = vmul.f32 %v4664_v53, %v408_v18  ;;  %v435_v62 = vmul.f32 %v4664_v53, %v410_v20  ;;  %3523 = vmatprep.mubr.bf16.mxu1 %v3040_v55  ;;  %v1228_v9 = vshrl.u32 %v4528_v33, 16 }
  0x81   : > { %3616 = vmatpush3.bf16.msra.mxu0 %v3874_v1  ;;  %v3269_v61 = vpack.c.bf16 %v515_v3, %v515_v3  ;;  %v3271_v60 = vpack.c.bf16 %v517_v57, %v517_v57  ;;  %v1219_v10 = vrot.slane %v1217_v6, 5  ;;  %3619 = vmatprep.mubr.bf16.mxu0 %v3304_v24  ;;  %v1231_v1 = vshll.u32 %v4528_v33, 16  ;;  %v3880_v33 = vld [vmem:[%s5019_s1 + $0x1c8] sm:$0xff]   ;;  %v414_v57 = vld [vmem:[%s4167_s20 + $0x78] sm:$0x1] }
  0x82   : > { %3617 = vmatprep.subr.bf16.mxu0 %v3876_v28  ;;  %v1207_v41 = vrot.slane %v1206_v17, 4  ;;  %v458_v45 = vadd.f32 %v4618_v16, %v433_v36  ;;  %v460_v14 = vadd.f32 %v4618_v16, %v435_v62  ;;  %v1230_v48 = vrot.slane %v1228_v9, 4  ;;  %v3879_v62 = vld [vmem:[%s5019_s1 + $0xc8] sm:$0xff]  }
  0x83   : > { %v1209_v44 = vshll.u32 %v3269_v61, 16  ;;  %v1220_v18 = vor.u32 %v1219_v10, %v1216_v7  ;;  %v1223_v20 = vshll.u32 %v3271_v60, 16  ;;  %v1233_v8 = vrot.slane %v1231_v1, 5 }
  0x84   : > { %v476_v32 = vmax.f32 %v458_v45, 0.0  ;;  %v478_v58 = vmax.f32 %v460_v14, 0.0  ;;  %v1242_v22 = vshrl.u32 %v4532_v46, 16  ;;  %v1245_v40 = vshll.u32 %v4532_v46, 16 }
  0x85   : > { %3618 = vmatpush3.bf16.msra.mxu0 %v3876_v28  ;;  %v1211_v24 = vrot.slane %v1209_v44, 5  ;;  %v1221_v34 = vrot.slane %v1220_v18, 4  ;;  %v1225_v27 = vrot.slane %v1223_v20, 5  ;;  %v1234_v55 = vor.u32 %v1233_v8, %v1230_v48  ;;  %v415_v8 = vld [vmem:[%s4167_s20 + $0x80] sm:$0xff] }
  0x86   : > { %3627 = vmatprep.subr.bf16.mxu0 %v3878_v4  ;;  %v519_v38 = vmul.f32 %v4365_v19, %v476_v32  ;;  %v521_v7 = vmul.f32 %v4365_v19, %v478_v58  ;;  %v1244_v3 = vrot.slane %v1242_v22, 4  ;;  %v1247_v46 = vrot.slane %v1245_v40, 5  ;;  %v3881_v22 = vld [vmem:[%s5019_s1 + $0xd0] sm:$0xff]  }
  0x87   : > { %v4714_v28 = vsel %vm4439_vm11, %v1207_v41, %v1211_v24  ;;  %v4718_v6 = vsel %vm4439_vm11, %v1221_v34, %v1225_v27  ;;  %v437_v17 = vmul.f32 %v4664_v53, %v412_v15  ;;  %v1235_v10 = vrot.slane %v1234_v55, 4 }
  0x88   : > { %v3041_v36 = vcombine.low %v4714_v28, %v4718_v6  ;;  %3620 = vmatmul.mubr.bf16.vlgmr.msra.gmra.mrb[0].mxu0 %v3305_v12  ;;  %v3273_v61 = vpack.c.bf16 %v519_v38, %v519_v38  ;;  %v3275_v60 = vpack.c.bf16 %v521_v7, %v521_v7  ;;  %v1248_v9 = vor.u32 %v1247_v46, %v1244_v3  ;;  %v3882_v12 = vld [vmem:[%s5019_s1 + $0x1d0] sm:$0xff]   ;;  %v3884_v7 = vld [vmem:[%s5019_s1 + $0x1d8] sm:$0xff]  }
  0x89   : > { %3628 = vmatpush3.bf16.msra.mxu0 %v3878_v4  ;;  %v439_v41 = vmul.f32 %v4664_v53, %v414_v57  ;;  %v462_v45 = vadd.f32 %v4618_v16, %v437_v17  ;;  %v1256_v14 = vshrl.u32 %v4583_v30, 16  ;;  %v1259_v18 = vshll.u32 %v4583_v30, 16  ;;  %v3883_v46 = vld [vmem:[%s5019_s1 + $0xd8] sm:$0xff]  }
  0x8a   : > { %3524 = vmatmul.mubr.bf16.vlgmr.msra.gmra.mrb[0].mxu1 %v3041_v36  ;;  %3629 = vmatprep.subr.bf16.mxu0 %v3880_v33  ;;  %v1237_v1 = vshll.u32 %v3273_v61, 16  ;;  %v1251_v44 = vshll.u32 %v3275_v60, 16  ;;  %v1270_v4 = vshrl.u32 %v4595_v25, 16  ;;  %v1249_v20 = vrot.slane %v1248_v9, 4 }
  0x8b   : > { %3532 = vmatpush3.bf16.msra.mxu1 %v4640_v29  ;;  %v464_v48 = vadd.f32 %v4618_v16, %v439_v41  ;;  %v480_v32 = vmax.f32 %v462_v45, 0.0  ;;  %v1258_v58 = vrot.slane %v1256_v14, 4  ;;  %v1261_v34 = vrot.slane %v1259_v18, 5  ;;  %v3886_v41 = vld [vmem:[%s5019_s1 + $0x1e0] sm:$0xff]  }
  0x8c   : > { %3533 = vmatprep.subr.bf16.mxu1 %v3879_v62  ;;  %v1239_v15 = vrot.slane %v1237_v1, 5  ;;  %v1253_v24 = vrot.slane %v1251_v44, 5  ;;  %v1272_v27 = vrot.slane %v1270_v4, 4  ;;  %v1273_v29 = vshll.u32 %v4595_v25, 16 }
  0x8d   : > { %3630 = vmatpush3.bf16.msra.mxu0 %v3880_v33  ;;  %v482_v30 = vmax.f32 %v464_v48, 0.0  ;;  %v523_v40 = vmul.f32 %v4365_v19, %v480_v32  ;;  %v3306_v38 = vpack.c.bf16 %v4569_v26, %v4517_v21  ;;  %v1262_v3 = vor.u32 %v1261_v34, %v1258_v58  ;;  %v3887_v58 = vld [vmem:[%s5019_s1 + $0xe8] sm:$0xff]   ;;  %v3893_v34 = vld [vmem:[%s5019_s1 + $0x200] sm:$0xff]  }
  0x8e   : > { %3631 = vmatprep.subr.bf16.mxu0 %v3882_v12  ;;  %v4749_v55 = vsel %vm4439_vm11, %v1235_v10, %v1239_v15  ;;  %v4753_v33 = vsel %vm4439_vm11, %v1249_v20, %v1253_v24  ;;  %v440_v57 = vmul.f32 %v4664_v53, %v415_v8  ;;  %v1275_v36 = vrot.slane %v1273_v29, 5  ;;  %v3888_v20 = vld [vmem:[%s5019_s1 + $0x1e8] sm:$0xff]  }
  0x8f   : > { %3534 = vmatpush3.bf16.msra.mxu1 %v3879_v62  ;;  %v3042_v21 = vcombine.low %v4749_v55, %v4753_v33  ;;  %v525_v26 = vmul.f32 %v4365_v19, %v482_v30  ;;  %v3277_v25 = vpack.c.bf16 %v523_v40, %v523_v40  ;;  %v1263_v17 = vrot.slane %v1262_v3, 4  ;;  %3623 = vmatprep.mubr.bf16.mxu0 %v3306_v38  ;;  %v3894_v29 = vld [vmem:[%s5019_s1 + $0x208] sm:$0xff]  }
  0x90   : > { %3535 = vmatprep.subr.bf16.mxu1 %v3881_v22  ;;  %v465_v61 = vadd.f32 %v4618_v16, %v440_v57  ;;  %v3281_v10 = vpack.c.bf16 %v4501_v52, %v4495_v42  ;;  %v3282_v9 = vpack.c.bf16 %v4552_v37, %v4545_v51  ;;  %v1276_v45 = vor.u32 %v1275_v36, %v1272_v27  ;;  %v3895_v27 = vld [vmem:[%s5024_s6] sm:$0xff]   ;;  %v3898_v51 = vld [vmem:[%s5019_s1 + $0x218] sm:$0xff]  }
  0x91   : > { %3632 = vmatpush3.bf16.msra.mxu0 %v3882_v12  ;;  %3527 = vmatprep.mubr.bf16.mxu1 %v3042_v21  ;;  %v3279_v60 = vpack.c.bf16 %v525_v26, %v525_v26  ;;  %v1265_v62 = vshll.u32 %v3277_v25, 16  ;;  %v3885_v12 = vld [vmem:[%s5019_s1 + $0xe0] sm:$0xff]   ;;  %v3280_v32 = vpack.c.bf16 %v4412_v59, %v4405_v56  ;;  %v3890_v56 = vld [vmem:[%s5019_s1 + $0x1f0] sm:$0xff]   ;;  %v3310_v40 = vpack.c.bf16 %v4345_v5, %v4321_v50  ;;  %v416_v5 = vld [vmem:[%s4167_s20 + $0x88] sm:$0x1] }
  0x92   : > { %3633 = vmatprep.subr.bf16.mxu0 %v3884_v7  ;;  %v483_v14 = vmax.f32 %v465_v61, 0.0  ;;  %v1277_v18 = vrot.slane %v1276_v45, 4  ;;  %v3889_v59 = vld [vmem:[%s5019_s1 + $0xf0] sm:$0xff]   ;;  %v5045_v38 = vpack.c.bf16 %v4311_v43, %v4246_v2  ;;  %v3226_v43 = vcombine.low %v4686_v54, %v4714_v28 }
  0x93   : > { %3536 = vmatpush3.bf16.msra.mxu1 %v3881_v22  ;;  %v1267_v1 = vrot.slane %v1265_v62, 5  ;;  %v1279_v44 = vshll.u32 %v3279_v60, 16  ;;  %v2932_v22 = vld [vmem:[%s4167_s20 + $0x110] sm:$0xff]  ;;  %v441_v57 = vmul.f32 %v4664_v53, %v416_v5  ;;  %v3283_v21 = vpack.c.bf16 %v4632_v39, %v4628_v23  ;;  %v3900_v23 = vld [vmem:[%s5019_s1 + $0x220] sm:$0xff]   ;;  %v3908_v62 = vld [vmem:[%s5024_s6 + $0x38] sm:$0xff]   ;;  %s3911_s20 = scalar_lea.vmem %s4918_s19, 1024 }
  0x94   : > { %3537 = vmatprep.subr.bf16.mxu1 %v3883_v46  ;;  %v4774_v42 = vmul.f32 %v4318_v49, %v483_v14  ;;  %v572_v15 = vmul.f32 %v4664_v53, %v2932_v22  ;;  %v3896_v50 = vld [vmem:[%s5019_s1 + $0x210] sm:$0xff]   ;;  %v3903_v39 = vld [vmem:[%s5024_s6 + $0x20] sm:$0xff]   ;;  %p3912_p12 = scmp.ne.s32.totalorder %s4918_s19, %s3911_s20  ;;  %p3919_p2 = scmp.lt.s32.totalorder %s3917_s21, %s3911_s20 }
  0x95   : > { %3634 = vmatpush3.bf16.msra.mxu0 %v3884_v7  ;;  %v4778_v52 = vsel %vm4439_vm11, %v1263_v17, %v1267_v1  ;;  %v1281_v4 = vrot.slane %v1279_v44, 5  ;;  %v3897_v7 = vld [vmem:[%s5024_s6 + $0x8] sm:$0xff]   ;;  %v3899_v2 = vld [vmem:[%s5024_s6 + $0x10] sm:$0xff]   ;;  %v466_v37 = vadd.f32 %v4618_v16, %v441_v57  ;;  %v4903_v22 = vld [vmem:[%s5023_s5] ss:$0 sm:$0xff] }
  0x96   : > { %3635 = vmatprep.subr.bf16.mxu0 %v3886_v41  ;;  %v3307_v48 = vpack.c.bf16 %v4774_v42, %v4577_v11  ;;  %v5044_v11 = vpack.c.bf16 %v4238_v63, %v4221_v47  ;;  %v3892_v47 = vld [vmem:[%s5019_s1 + $0x1f8] sm:$0xff]   ;;  %v590_v24 = vadd.f32 %v4618_v16, %v572_v15  ;;  %v3312_v53 = vpack.c.bf16 %v4774_v42, %v4774_v42  ;;  %v3902_v16 = vld [vmem:[%s5019_s1 + $0x228] sm:$0xff]   ;;  %v3907_v17 = vld [vmem:[%s5024_s6 + $0x30] sm:$0xff]   ;;  %p3913_p13 = pnand %p3912_p12, %p4115_p4  ;;  %p3920_p3 = por %p3919_p2, %p3918_p1 }
  0x97   : > { %3538 = vmatpush3.bf16.msra.mxu1 %v3883_v46  ;;  %v4787_v49 = vsel %vm4439_vm11, %v1277_v18, %v1281_v4  ;;  %v3891_v63 = vld [vmem:[%s5019_s1 + $0xf8] sm:$0xff]   ;;  %v484_v54 = vmax.f32 %v466_v37, 0.0  ;;  %v3904_v46 = vld [vmem:[%s5019_s1 + $0x230] sm:$0xff]   ;;  %v3228_v45 = vcombine.low %v4753_v33, %v4778_v52  ;;  %v5047_v18 = vld [vmem:[#allocation9_spill] sm:$0xff] }
  0x98   : > { %3539 = vmatprep.subr.bf16.mxu1 %v3885_v12  ;;  %v3043_v8 = vcombine.low %v4778_v52, %v4787_v49  ;;  %3624 = vmatmul.mubr.bf16.gmra.mrb[4].mxu0 %v3307_v48  ;;  %v608_v30 = vmax.f32 %v590_v24, 0.0  ;;  %v2351_v28 = vshrl.u32 %v3312_v53, 16  ;;  %v2354_v26 = vshll.u32 %v3312_v53, 16  ;;  %p3914_p0 = pneg %p3913_p13 }
  0x99   : > { %3636 = vmatpush3.bf16.msra.mxu0 %v3886_v41  ;;  %3643 = vmatprep.mubr.bf16.mxu0 %v5044_v11  ;;  %v527_v25 = vmul.f32 %v4365_v19, %v484_v54  ;;  %v3906_v19 = vld [vmem:[%s5019_s1 + $0x238] sm:$0xff]   ;;  %v3227_v41 = vcombine.low %v4718_v6, %v4749_v55  ;;  %v5048_v55 = vld [vmem:[#allocation10_spill] sm:$0xff] }
  0x9a   : > { %3637 = vmatprep.subr.bf16.mxu0 %v3888_v20  ;;  %3528 = vmatmul.mubr.bf16.gmra.mrb[4].mxu1 %v3043_v8  ;;  %v648_v3 = vmul.f32 %v4204_v31, %v608_v30  ;;  %v2353_v36 = vrot.slane %v2351_v28, 4  ;;  %v2356_v61 = vrot.slane %v2354_v26, 5  ;;  %p3921_p5 = pnand %p3920_p3, %p3914_p0 }
  0x9b   : > { %3540 = vmatpush3.bf16.msra.mxu1 %v3885_v12  ;;  %3547 = vmatprep.mubr.bf16.mxu1 %v3280_v32  ;;  %v3313_v60 = vpack.c.bf16 %v527_v25, %v527_v25  ;;  %v5046_v12 = vld [vmem:[#allocation8_spill] sm:$0xff] }
  0x9c   : > { %3541 = vmatprep.subr.bf16.mxu1 %v3887_v58  ;;  %v3311_v31 = vpack.c.bf16 %v648_v3, %v4355_v13  ;;  %v3901_v13 = vld [vmem:[%s5024_s6 + $0x18] sm:$0xff]  }
  0x9d   : > { %3638 = vmatpush3.bf16.msra.mxu0 %v3888_v20 }
  0x9e   : > { %3639 = vmatprep.subr.bf16.mxu0 %v3890_v56 }
  0x9f   : > { %3542 = vmatpush3.bf16.msra.mxu1 %v3887_v58 }
  0xa0   : > { %3543 = vmatprep.subr.bf16.mxu1 %v3889_v59 }
  0xa1   : > { %3640 = vmatpush3.bf16.msra.mxu0 %v3890_v56 }
  0xa2   : > { %3641 = vmatprep.subr.bf16.mxu0 %v3892_v47 }
  0xa3   : > { %3544 = vmatpush3.bf16.msra.mxu1 %v3889_v59 }
  0xa4   : > { %3545 = vmatprep.subr.bf16.mxu1 %v3891_v63 }
  0xa5   : > { %3642 = vmatpush3.bf16.msra.mxu0 %v3892_v47 }
  0xa6   : > { %3651 = vmatprep.subr.bf16.mxu0 %v3893_v34 }
  0xa7   : > { %3546 = vmatpush3.bf16.msra.mxu1 %v3891_v63 }
  0xa8   : > { %3644 = vmatmul.mubr.bf16.vlgmr.msra.gmra.mrb[0].mxu0 %v5045_v38  ;;  %3675 = vmatprep.subr.bf16.mxu1 %v3895_v27 }
  0xa9   : > { %3652 = vmatpush3.bf16.msra.mxu0 %v3893_v34  ;;  %3647 = vmatprep.mubr.bf16.mxu0 %v3310_v40 }
  0xaa   : > { %3548 = vmatmul.mubr.bf16.vlgmr.msra.gmra.mrb[0].mxu1 %v3281_v10  ;;  %3653 = vmatprep.subr.bf16.mxu0 %v3894_v29  ;;  %v2357_v10 = vor.u32 %v2356_v61, %v2353_v36 }
  0xab   : > { %3551 = vmatprep.mubr.bf16.mxu1 %v3282_v9  ;;  %3676 = vmatpush3.bf16.msra.mxu1 %v3895_v27  ;;  %v2360_v9 = vshll.u32 %v3313_v60, 16 }
  0xac   : > { %3677 = vmatprep.subr.bf16.mxu1 %v3897_v7  ;;  %v2358_v14 = vrot.slane %v2357_v10, 4 }
  0xad   : > { %3654 = vmatpush3.bf16.msra.mxu0 %v3894_v29  ;;  %v2362_v1 = vrot.slane %v2360_v9, 5 }
  0xae   : > { %3655 = vmatprep.subr.bf16.mxu0 %v3896_v50 }
  0xaf   : > { %3678 = vmatpush3.bf16.msra.mxu1 %v3897_v7  ;;  %v2363_v44 = vsel %vm4439_vm11, %v2358_v14, %v2362_v1 }
  0xb0   : > { %3679 = vmatprep.subr.bf16.mxu1 %v3899_v2  ;;  %3648 = vmatmul.mubr.bf16.gmra.mrb[4].mxu0 %v3311_v31  ;;  %v3229_v6 = vcombine.low %v4787_v49, %v2363_v44  ;;  %v3238_v49 = vld [vmem:[%s5022_s4] ss:$0 sm:$0xff] }
  0xb1   : > { %3656 = vmatpush3.bf16.msra.mxu0 %v3896_v50  ;;  %3667 = vmatprep.mubr.bf16.mxu0 %v3226_v43 }
  0xb2   : > { %3552 = vmatmul.mubr.bf16.gmra.mrb[4].mxu1 %v3283_v21  ;;  %3657 = vmatprep.subr.bf16.mxu0 %v3898_v51 }
  0xb3   : > { %3680 = vmatpush3.bf16.msra.mxu1 %v3899_v2  ;;  %3691 = vmatprep.mubr.bf16.mxu1 %v4240_v0  ;;  %v3905_v0 = vld [vmem:[%s5024_s6 + $0x28] sm:$0xff]  }
  0xb4   : > { %3681 = vmatprep.subr.bf16.mxu1 %v3901_v13 }
  0xb5   : > { %3658 = vmatpush3.bf16.msra.mxu0 %v3898_v51 }
  0xb6   : > { %3659 = vmatprep.subr.bf16.mxu0 %v3900_v23 }
  0xb7   : > { %3682 = vmatpush3.bf16.msra.mxu1 %v3901_v13 }
  0xb8   : > { %3683 = vmatprep.subr.bf16.mxu1 %v3903_v39 }
  0xb9   : > { %3660 = vmatpush3.bf16.msra.mxu0 %v3900_v23 }
  0xba   : > { %3661 = vmatprep.subr.bf16.mxu0 %v3902_v16 }
  0xbb   : > { %3684 = vmatpush3.bf16.msra.mxu1 %v3903_v39 }
  0xbc   : > { %3685 = vmatprep.subr.bf16.mxu1 %v3905_v0 }
  0xbd   : > { %3662 = vmatpush3.bf16.msra.mxu0 %v3902_v16 }
  0xbe   : > { %3663 = vmatprep.subr.bf16.mxu0 %v3904_v46 }
  0xbf   : > { %3686 = vmatpush3.bf16.msra.mxu1 %v3905_v0 }
  0xc0   : > { %3687 = vmatprep.subr.bf16.mxu1 %v3907_v17 }
  0xc1   : > { %3664 = vmatpush3.bf16.msra.mxu0 %v3904_v46 }
  0xc2   : > { %3665 = vmatprep.subr.bf16.mxu0 %v3906_v19 }
  0xc3   : > { %3688 = vmatpush3.bf16.msra.mxu1 %v3907_v17 }
  0xc4   : > { %3689 = vmatprep.subr.bf16.mxu1 %v3908_v62 }
  0xc5   : > { %3666 = vmatpush3.bf16.msra.mxu0 %v3906_v19 }
  0xc7   : > { %3690 = vmatpush3.bf16.msra.mxu1 %v3908_v62 }
  0xc8   : > { %3668 = vmatmul.mubr.bf16.vlgmr.msra.gmra.mrb[0].mxu0 %v3227_v41 }
  0xc9   : > { %3671 = vmatprep.mubr.bf16.mxu0 %v3228_v45 }
  0xca   : > { %3692 = vmatmul.mubr.bf16.vlgmr.msra.gmra.mrb[8].mxu1 %v5046_v12 }
  0xcb   : > { %3695 = vmatprep.mubr.bf16.mxu1 %v5047_v18 }
  0xd0   : > { %3672 = vmatmul.mubr.bf16.gmra.mrb[4].mxu0 %v3229_v6 }
  0xd2   : > { %3696 = vmatmul.mubr.bf16.gmra.mrb[12].mxu1 %v5048_v55 }
 0x17d   : > { %v3549_v42 = vpop.f32.mrb[0].mxu1 }
 0x17e   : > { %v1560_v33 = vpop.f32.mrb[1].mxu1 }
 0x17f   : > { %v3550_v52 = vpop.f32.mrb[2].mxu1 }
 0x180   : > { %v1563_v4 = vpop.f32.mrb[3].mxu1 }
 0x185   : > { %v3553_v20 = vpop.f32.mrb[4].mxu1 }
 0x186   : > { %v1576_v48 = vpop.f32.mrb[5].mxu1 }
 0x187   : > { %v3554_v32 = vpop.f32.mrb[6].mxu1 }
 0x188   : > { %v1579_v58 = vpop.f32.mrb[7].mxu1 }
 0x19b   : > { %v3669_v35 = vpop.f32.mrb[0].mxu0 }
 0x19c   : > { %v3699_v8 = vadd.f32 %v3669_v35, %v3549_v42  ;;  %v2472_v11 = vpop.f32.mrb[1].mxu0 }
 0x19d   : > { %v3700_v56 = vadd.f32 %v2472_v11, %v1560_v33  ;;  %v3670_v59 = vpop.f32.mrb[2].mxu0  ;;  %v3693_v15 = vpop.f32.mrb[8].mxu1 }
 0x19e   : > { %v2520_v47 = vmul.f32 %v3699_v8, %v3238_v49  ;;  %v3701_v63 = vadd.f32 %v3670_v59, %v3550_v52  ;;  %v2475_v24 = vpop.f32.mrb[3].mxu0  ;;  %2696 = vst [vmem:[%s4905_s14 + $0x10] sm:$0xff] %v3693_v15  ;;  %v2663_v34 = vpop.f32.mrb[9].mxu1 }
 0x19f   : > { %v2518_v27 = vmul.f32 %v3700_v56, %v3238_v49  ;;  %v3702_v30 = vadd.f32 %v2475_v24, %v1563_v4  ;;  %2694 = vst [vmem:[%s4905_s14] sm:$0xff] %v2663_v34  ;;  %v3694_v40 = vpop.f32.mrb[10].mxu1 }
 0x1a0   : > { %v2535_v29 = vadd.f32 %v4903_v22, %v2520_v47  ;;  %v2521_v38 = vmul.f32 %v3701_v63, %v3238_v49  ;;  %2697 = vst [vmem:[%s4905_s14 + $0x18] sm:$0xff] %v3694_v40  ;;  %v2666_v7 = vpop.f32.mrb[11].mxu1 }
 0x1a1   : > { %v2533_v3 = vadd.f32 %v4903_v22, %v2518_v27  ;;  %v2519_v50 = vmul.f32 %v3702_v30, %v3238_v49  ;;  %2695 = vst [vmem:[%s4905_s14 + $0x8] sm:$0xff] %v2666_v7 }
 0x1a2   : > { %v2536_v5 = vadd.f32 %v4903_v22, %v2521_v38  ;;  %v2543_v43 = vmax.f32 %v2535_v29, 0.0 }
 0x1a3   : > { %v2534_v2 = vadd.f32 %v4903_v22, %v2519_v50  ;;  %v3673_v31 = vpop.f32.mrb[4].mxu0  ;;  %v2541_v13 = vmax.f32 %v2533_v3, 0.0 }
 0x1a4   : > { %v2544_v57 = vmax.f32 %v2536_v5, 0.0  ;;  %v3703_v21 = vadd.f32 %v3673_v31, %v3553_v20  ;;  %v2488_v51 = vpop.f32.mrb[5].mxu0 }
 0x1a5   : > { %v2542_v37 = vmax.f32 %v2534_v2, 0.0  ;;  %v3704_v23 = vadd.f32 %v2488_v51, %v1576_v48  ;;  %v3674_v39 = vpop.f32.mrb[6].mxu0  ;;  %v3697_v53 = vpop.f32.mrb[12].mxu1 }
 0x1a6   : > { %v3324_v54 = vpack.c.bf16 %v2544_v57, %v2543_v43  ;;  %v2524_v16 = vmul.f32 %v3703_v21, %v3238_v49  ;;  %v3705_v0 = vadd.f32 %v3674_v39, %v3554_v32  ;;  %v2491_v28 = vpop.f32.mrb[7].mxu0  ;;  %2700 = vst [vmem:[%s4905_s14 + $0x30] sm:$0xff] %v3697_v53  ;;  %v2679_v26 = vpop.f32.mrb[13].mxu1 }
 0x1a7   : > { %v3319_v25 = vpack.c.bf16 %v2542_v37, %v2541_v13  ;;  %v2522_v46 = vmul.f32 %v3704_v23, %v3238_v49  ;;  %v3706_v17 = vadd.f32 %v2491_v28, %v1579_v58  ;;  %2698 = vst [vmem:[%s4905_s14 + $0x20] sm:$0xff] %v2679_v26  ;;  %v3698_v36 = vpop.f32.mrb[14].mxu1 }
 0x1a8   : > { %3336 = vst [vmem:[%s4927_s11 + $0x8] sm:$0xff] %v3324_v54   ;;  %v2539_v61 = vadd.f32 %v4903_v22, %v2524_v16  ;;  %v2525_v60 = vmul.f32 %v3705_v0, %v3238_v49  ;;  %2701 = vst [vmem:[%s4905_s14 + $0x38] sm:$0xff] %v3698_v36  ;;  %v2682_v19 = vpop.f32.mrb[15].mxu1 }
 0x1a9   : > { %3320 = vst [vmem:[%s4927_s11] sm:$0xff] %v3319_v25   ;;  %v2537_v62 = vadd.f32 %v4903_v22, %v2522_v46  ;;  %v2523_v10 = vmul.f32 %v3706_v17, %v3238_v49  ;;  %2699 = vst [vmem:[%s4905_s14 + $0x28] sm:$0xff] %v2682_v19 }
 0x1aa   : > { %v2540_v9 = vadd.f32 %v4903_v22, %v2525_v60 }
 0x1ab   : > { %3924 = shalt.err (!%p3921_p5)
}
 0x1ac   : > { %s3925_s14 = scalar_lea.hbm %s4924_s26, 1024  ;;  %s3929_s12 = scalar_lea.hbm %s5026_s8, 2048 }
 0x1ad   : > { %p3926_p6 = scmp.ne.s32.totalorder %s4924_s26, %s3925_s14  ;;  %p3930_p10 = scmp.lt.u32.totalorder %s4924_s26, %s5026_s8 }
 0x1ae   : > { %p3931_p11 = scmp.lt.u32.totalorder %s3929_s12, %s3925_s14  ;;  %p3933_p13 = scmp.lt.u32.totalorder %s3925_s14, %s4924_s26 }
 0x1af   : > { %p3927_p7 = pnand %p3926_p6, %p4115_p4 }
 0x1b0   : > { %p3932_p12 = por %p3931_p11, %p3930_p10 }
 0x1b1   : > { %p3928_p9 = pneg %p3927_p7 }
 0x1b2   : > { %p3934_p0 = por %p3933_p13, %p3932_p12 }
 0x1b4   : > { %p3935_p1 = pnand %p3934_p0, %p3928_p9 }
 0x1b6   : > { %3938 = shalt.err (!%p3935_p1)
}
 0x1b7   : > { %s4025_s20 = smov 128   ;;  %s4026_s21 = smov 8   ;;  %v2538_v41 = vadd.f32 %v4903_v22, %v2523_v10  ;;  %v2547_v45 = vmax.f32 %v2539_v61, 0.0  ;;  %v2548_v14 = vmax.f32 %v2540_v9, 0.0  ;;  %v2545_v1 = vmax.f32 %v2537_v62, 0.0 }
 0x1b8   : > { %s5049_s25 = scalar_lea.sflag [#allocation5], %s4894_s24  ;;  %s3314_s14 = sshll.u32 %s4013_s30, 9 }
 0x1b9   : > { %3765 = dma.vmem_to_hbm [thread:$0]  (%p4115_p4), %s4918_s19, 1024, %s4924_s26, %s5049_s25, %s4025_s20, %s4025_s20, %s4026_s21   ;;  %v2546_v44 = vmax.f32 %v2538_v41, 0.0  ;;  %v3334_v12 = vpack.c.bf16 %v2548_v14, %v2547_v45 }
 0x1ba   : > { %s2722_s22 = sshll.u32 %s4927_s11, 4  ;;  %s4966_s16 = scalar_lea.hbm %s5025_s7, %s3314_s14  ;;  %s4968_s22 = int_to_ptr.vmem [resolvable:$true] %s2722_s22 }
 0x1bb   : > { %v3329_v18 = vpack.c.bf16 %v2546_v44, %v2545_v1  ;;  %3338 = vst [vmem:[%s4927_s11 + $0x18] sm:$0xff] %v3334_v12   ;;  %s2703_s30 = scalar_lea.sflag [#allocation3], %s4894_s24  ;;  %s3939_s19 = scalar_lea.vmem %s4968_s22, 512 }
 0x1bc   : > { %p3940_p2 = scmp.ne.s32.totalorder %s4968_s22, %s3939_s19  ;;  %s4027_s26 = smov [#allocation2]  }
 0x1bd   : > { %3337 = vst [vmem:[%s4927_s11 + $0x10] sm:$0xff] %v3329_v18   ;;  %s3943_s20 = sshll.u32 %s4027_s26, 4  ;;  %s3944_s20 = int_to_ptr.vmem [resolvable:$false] %s3943_s20 }
 0x1be   : > { %p3941_p3 = pnand %p3940_p2, %p4115_p4  ;;  %s3945_s21 = scalar_lea.vmem %s3944_s20, 1024 }
 0x1bf   : > { %p3946_p6 = scmp.lt.s32.totalorder %s4968_s22, %s3944_s20  ;;  %p3947_p7 = scmp.lt.s32.totalorder %s3945_s21, %s3939_s19 }
 0x1c0   : > { %p3942_p5 = pneg %p3941_p3 }
 0x1c1   : > { %p3948_p9 = por %p3947_p7, %p3946_p6 }
 0x1c3   : > { %p3949_p10 = pnand %p3948_p9, %p3942_p5 }
 0x1c5   : > { %3952 = shalt.err (!%p3949_p10)
}
 0x1c6   : > { %s3953_s11 = scalar_lea.hbm %s4966_s16, 512  ;;  %s3957_s23 = scalar_lea.hbm %s5025_s7, 1024 }
 0x1c7   : > { %p3954_p11 = scmp.ne.s32.totalorder %s4966_s16, %s3953_s11  ;;  %p3958_p0 = scmp.lt.u32.totalorder %s4966_s16, %s5025_s7 }
 0x1c8   : > { %p3959_p1 = scmp.lt.u32.totalorder %s3957_s23, %s3953_s11  ;;  %p3961_p3 = scmp.lt.u32.totalorder %s3953_s11, %s4966_s16 }
 0x1c9   : > { %p3955_p12 = pnand %p3954_p11, %p4115_p4 }
 0x1ca   : > { %p3960_p2 = por %p3959_p1, %p3958_p0 }
 0x1cb   : > { %p3956_p13 = pneg %p3955_p12 }
 0x1cc   : > { %p3962_p5 = por %p3961_p3, %p3960_p2 }
 0x1ce   : > { %p3963_p6 = pnand %p3962_p5, %p3956_p13 }
 0x1d0   : > { %3966 = shalt.err (!%p3963_p6)
}
 0x1d1   : > { %s4028_s19 = smov 64   ;;  %s4029_s20 = smov 4  }
 0x1d2   : > { %3764 = dma.vmem_to_hbm [thread:$0]  (%p4115_p4), %s4968_s22, 512, %s4966_s16, %s2703_s30, %s4028_s19, %s4028_s19, %s4029_s20  }
 0x1d3 PF: > { %p3775_p7 = scmp.ge.s32.totalorder %s4021_s10, 2  ;;  %s2754_s21 = sand.u32 1, %s4001_s27  }
 0x1d4   : > { %s2755_s11 = scalar_lea.sflag [#allocation3], %s2754_s21 }
 0x1d5   : > { %p3769_p9 = pnand %p3775_p7, %p4122_p8 }
 0x1d7   : > { %3992 = dma.done.wait (!%p3769_p9), %s2755_s11, 512  }
 0x1d8   : > { %3994 = vsyncadd (!%p3769_p9), %s2755_s11, 4294966784  ;;  %s2764_s25 = scalar_lea.sflag [#allocation5], %s2754_s21 }
 0x1d9   : > { %3996 = dma.done.wait (!%p3769_p9), %s2764_s25, 1024  }
 0x1da   : > { %3998 = vsyncadd (!%p3769_p9), %s2764_s25, 4294966272  ;;  %s25_s10 = sadd.s32 1, %s4021_s10   ;;  %s5050_s27 = smov %s4005_s28 }
 0x1db   : > { %p22_p10 = scmp.ge.s32.totalorder %s25_s10, 4   ;;  %s5051_s28 = smov %s4009_s29 }
 0x1dc   : > { %s5052_s29 = smov %s4128_s18  ;;  %s5053_s30 = smov %s4017_s9 }
 0x1dd   : > { %s5054_s9 = smov %s5056_s13  ;;  %24 = sbr.rel (!%p22_p10) target bundleno = 6 (0x6), region = 123 }
 0x1e4   :  { %2769 = vsyncpa [#allocation3], 1 }
 0x1e5   :  { %2771 = vsyncpa [#allocation3 + $0x1], 1 }
 0x1e6   :  { %2772 = vsyncpa [#allocation5], 1 }
 0x1e7   :  { %2774 = vsyncpa [#allocation5 + $0x1], 1 }

</bundles_post_ra>
